<compile_context>
chip_gen: v7x
topology: tpu7x:2x2x1
jax: 0.10.0
libtpu: 0.0.40
codegen_flags: <defaults>
</compile_context>

<pallas_src>
import functools

import jax
import jax.numpy as jnp
from jax import lax
from jax.experimental import pallas as pl
from jax.experimental.pallas import tpu as pltpu

_SUBLANE = 8
_LANE = 128
_XP_SCRATCH_BYTES_CAP = 4 * 1024 * 1024   # per-chunk f32 projection scratch budget


def _round_up(x, m):
    return ((x + m - 1) // m) * m


def _pad_gate_cols(w, h, hp):
    """w: (..., 4*h) with gate blocks [i|f|g|o]; zero-pad each block's width h -> hp."""
    lead = w.shape[:-1]
    w4 = w.reshape(lead + (4, h))
    w4 = jnp.pad(w4, [(0, 0)] * len(lead) + [(0, 0), (0, hp - h)])
    return w4.reshape(lead + (4 * hp,))


def _sigmoid_fast(x):
    # exp (EUP) + approx reciprocal (EUP vrcp) -> no Newton-refine VPU ops on the serial path.
    return pl.reciprocal(1.0 + jnp.exp(-x), approx=True)


def _fused_subnet_kernel(x_ref, w_ih_ref, w_hh_ref, w1_ref, b1_ref, w2_ref, b2_ref,
                         out_ref, xp_ref, *, seq_len, chunk_len, n_chunks,
                         batch_p, hidden_p, unroll):
    """Single invocation (no grid): per-chunk projection matmul -> in-kernel recurrence ->
    fused MLP head.  x_ref: (n_chunks, Tc*Bp, K_aug) bf16 (ones column folds the bias in)."""
    T, Tc, Bp, Hp = seq_len, chunk_len, batch_p, hidden_p
    needs_mask = (n_chunks * Tc != T)   # only the last chunk can contain padded timesteps

    # Loop-invariant weight loads hoisted out of all loops (small: ~8 + ~32 vregs in bf16).
    w_ih = w_ih_ref[...]
    w_hh = w_hh_ref[...]

    def lstm_step(t, carry, t_base):
        h, c = carry
        off = pl.multiple_of(t * Bp, _SUBLANE)        # Bp is a multiple of 8 -> aligned slice
        xp_t = xp_ref[pl.ds(off, Bp), :]              # (Bp, 4Hp) f32, bias already folded in
        gates = xp_t + jnp.dot(h.astype(w_hh.dtype), w_hh,
                               preferred_element_type=jnp.float32)
        # Hp is a multiple of 128 -> each gate slice is a whole-lane (free) vreg view.
        # PyTorch LSTM gate order [i, f, g, o].
        i_g = _sigmoid_fast(gates[:, 0 * Hp:1 * Hp])
        f_g = _sigmoid_fast(gates[:, 1 * Hp:2 * Hp])
        g_g = jnp.tanh(gates[:, 2 * Hp:3 * Hp])
        o_g = _sigmoid_fast(gates[:, 3 * Hp:4 * Hp])
        c_new = f_g * c + i_g * g_g
        h_new = o_g * jnp.tanh(c_new)
        if needs_mask:  # trace-time constant: only emitted when T % Tc != 0
            valid = (t_base + t) < T
            h_new = jnp.where(valid, h_new, h)
            c_new = jnp.where(valid, c_new, c)
        return h_new, c_new

    def chunk_body(k, carry):
        # ---- Phase 1 (per chunk): hoisted input projection, ONE MXU matmul, bias folded ----
        xp_ref[...] = jnp.dot(x_ref[k], w_ih, preferred_element_type=jnp.float32)
        # ---- Phase 2: serial recurrence over this chunk; h/c live in vregs ----
        t_base = k * Tc
        return lax.fori_loop(0, Tc, lambda t, cr: lstm_step(t, cr, t_base),
                             carry, unroll=unroll)

    init = (jnp.zeros((Bp, Hp), jnp.float32), jnp.zeros((Bp, Hp), jnp.float32))
    if n_chunks == 1:                                  # static shortcut (no outer loop)
        h_fin, _ = chunk_body(0, init)
    else:
        h_fin, _ = lax.fori_loop(0, n_chunks, chunk_body, init)

    # ---- Phase 3: MLP head; dropout == identity (eval mode) ----
    y1 = jnp.maximum(
        jnp.dot(h_fin.astype(w1_ref.dtype), w1_ref[...],
                preferred_element_type=jnp.float32) + b1_ref[...], 0.0)
    y2 = jnp.maximum(
        jnp.dot(y1.astype(w2_ref.dtype), w2_ref[...],
                preferred_element_type=jnp.float32) + b2_ref[...], 0.0)
    out_ref[...] = y2.astype(out_ref.dtype)


def adaptive_rank_text_subnet(x, params):
    """x: (batch, seq, in_size) float32 -> (batch, out_size) float32."""
    B, T, in_size = x.shape
    H = params["w_hh"].shape[0]
    out_size = params["w1"].shape[1]

    Bp = _round_up(max(B, _SUBLANE), _SUBLANE)   # sublane-dense batch
    Hp = _round_up(H, _LANE)                     # lane-aligned gate blocks
    Op = _round_up(out_size, _LANE)              # lane-dense output store

    f32, bf16 = jnp.float32, jnp.bfloat16

    # Time-chunking: cap the per-chunk f32 projection scratch so VMEM stays bounded with T.
    step_bytes = Bp * 4 * Hp * 4
    Tc = max(1, min(T, _XP_SCRATCH_BYTES_CAP // step_bytes))
    n_chunks = (T + Tc - 1) // Tc
    Tp = n_chunks * Tc

    # --- zero-pad weights; padded hidden/output units stay exactly inert ---
    w_ih = _pad_gate_cols(params["w_ih"].astype(f32), H, Hp)            # (in, 4Hp)
    b = _pad_gate_cols(params["b"].astype(f32), H, Hp)                  # (1, 4Hp)
    w_hh = _pad_gate_cols(params["w_hh"].astype(f32), H, Hp)            # (H, 4Hp)
    w_hh = jnp.pad(w_hh, ((0, Hp - H), (0, 0)))                         # (Hp, 4Hp)
    w1 = jnp.pad(params["w1"].astype(f32), ((0, Hp - H), (0, Op - out_size)))
    b1 = jnp.pad(params["b1"].astype(f32), ((0, 0), (0, Op - out_size)))
    w2 = jnp.pad(params["w2"].astype(f32), ((0, Op - out_size), (0, Op - out_size)))
    b2 = jnp.pad(params["b2"].astype(f32), ((0, 0), (0, Op - out_size)))

    # --- fold the LSTM bias into the projection matmul: bias row in W_ih, ones column in x ---
    K_aug = _round_up(in_size + 1, 16)                                  # bf16 sublane packing
    w_ih_aug = jnp.concatenate(
        [w_ih, b, jnp.zeros((K_aug - in_size - 1, 4 * Hp), f32)], axis=0)   # (K_aug, 4Hp)

    # --- time-major, batch-padded, chunked input: (n_chunks, Tc*Bp, K_aug) ---
    x_tm = jnp.transpose(x, (1, 0, 2)).astype(f32)                      # (T, B, in)
    x_tm = jnp.pad(x_tm, ((0, Tp - T), (0, Bp - B), (0, 0)))            # (Tp, Bp, in)
    ones = jnp.ones((Tp, Bp, 1), f32)
    zpad = jnp.zeros((Tp, Bp, K_aug - in_size - 1), f32)
    x_aug = jnp.concatenate([x_tm, ones, zpad], axis=-1)                # (Tp, Bp, K_aug)
    x3d = x_aug.reshape(n_chunks, Tc * Bp, K_aug).astype(bf16)

    # bf16 matmul operands (f32 accumulation inside the kernel); MLP biases stay f32.
    w_ih_aug, w_hh, w1, w2 = (a.astype(bf16) for a in (w_ih_aug, w_hh, w1, w2))

    # --- VMEM budget from the actual buffer footprint (floor 16 MiB, cap 56 MiB for v7x) ---
    def _nbytes(a):
        return a.size * a.dtype.itemsize
    buf_bytes = sum(_nbytes(a) for a in (x3d, w_ih_aug, w_hh, w1, b1, w2, b2))
    buf_bytes += Bp * Op * 4                      # output
    buf_bytes += Tc * Bp * 4 * Hp * 4             # projection scratch (f32)
    vmem_limit = int(min(56 * 1024 * 1024, max(16 * 1024 * 1024, 2 * buf_bytes)))

    kernel = functools.partial(
        _fused_subnet_kernel,
        seq_len=T, chunk_len=Tc, n_chunks=n_chunks,
        batch_p=Bp, hidden_p=Hp, unroll=min(Tc, 8))
    vmem_spec = pl.BlockSpec(memory_space=pltpu.MemorySpace.VMEM)

    out_p = pl.pallas_call(
        kernel,
        out_shape=jax.ShapeDtypeStruct((Bp, Op), f32),
        in_specs=[vmem_spec] * 7,
        out_specs=vmem_spec,
        scratch_shapes=[
            pltpu.VMEM((Tc * Bp, 4 * Hp), f32),   # per-chunk x-projection (bias folded in)
        ],
        compiler_params=pltpu.CompilerParams(vmem_limit_bytes=vmem_limit),
    )(x3d, w_ih_aug, w_hh, w1, b1, w2, b2)

    return out_p[:B, :out_size]


def init_params(key, in_size, hidden_size, out_size):
    """Deterministic dense-equivalent parameters (PyTorch-style uniform init)."""
    ks = jax.random.split(key, 8)
    H = hidden_size
    bound_lstm = 1.0 / jnp.sqrt(H)
    bound_l1 = 1.0 / jnp.sqrt(H)
    bound_l2 = 1.0 / jnp.sqrt(out_size)

    def u(k, shape, bound):
        return jax.random.uniform(k, shape, jnp.float32, -bound, bound)

    # LSTM weights stored pre-transposed for "x @ W" in the kernel, gate order [i, f, g, o].
    w_ih = u(ks[0], (in_size, 4 * H), bound_lstm)
    w_hh = u(ks[1], (H, 4 * H), bound_lstm)
    b_ih = u(ks[2], (1, 4 * H), bound_lstm)
    b_hh = u(ks[3], (1, 4 * H), bound_lstm)
    w1 = u(ks[4], (H, out_size), bound_l1)
    b1 = u(ks[5], (1, out_size), bound_l1)
    w2 = u(ks[6], (out_size, out_size), bound_l2)
    b2 = u(ks[7], (1, out_size), bound_l2)
    return {"w_ih": w_ih, "w_hh": w_hh, "b": b_ih + b_hh,
            "w1": w1, "b1": b1, "w2": w2, "b2": b2}


if __name__ == "__main__":
    batch, seq, in_size, hidden_size, out_size = 2, 8, 16, 32, 16

    key = jax.random.PRNGKey(0)
    k_x, k_p = jax.random.split(key)
    x = jax.random.normal(k_x, (batch, seq, in_size), jnp.float32)
    params = init_params(k_p, in_size, hidden_size, out_size)

    out = adaptive_rank_text_subnet(x, params)
    out = jax.block_until_ready(out)
    assert out.shape == (batch, out_size), out.shape
    assert bool(jnp.all(jnp.isfinite(out)))
    assert bool(jnp.all(out >= 0.0))  # relu output
    print("KERNEL_OK")
</pallas_src>

<mosaic_0001>
module attributes {stable_mosaic.version = 11 : i64} {
  func.func @_fused_subnet_kernel(%arg0: memref<1x64x32xbf16, #tpu.memory_space<vmem>>, %arg1: memref<32x512xbf16, #tpu.memory_space<vmem>>, %arg2: memref<128x512xbf16, #tpu.memory_space<vmem>>, %arg3: memref<128x128xbf16, #tpu.memory_space<vmem>>, %arg4: memref<1x128xf32, #tpu.memory_space<vmem>>, %arg5: memref<128x128xbf16, #tpu.memory_space<vmem>>, %arg6: memref<1x128xf32, #tpu.memory_space<vmem>>, %arg7: memref<8x128xf32, #tpu.memory_space<vmem>>, %arg8: memref<64x512xf32, #tpu.memory_space<vmem>>) attributes {dimension_semantics = [], scalar_prefetch = 0 : i64, scratch_operands = 1 : i64, tpu.core_type = #tpu.core_type<tc>} {
    %c0 = arith.constant 0 : index
    %c0_0 = arith.constant 0 : index
    %0 = vector.load %arg1[%c0, %c0_0] : memref<32x512xbf16, #tpu.memory_space<vmem>>, vector<32x512xbf16>
    %c0_1 = arith.constant 0 : index
    %c0_2 = arith.constant 0 : index
    %1 = vector.load %arg2[%c0_1, %c0_2] : memref<128x512xbf16, #tpu.memory_space<vmem>>, vector<128x512xbf16>
    %cst = arith.constant 0.000000e+00 : f32
    %2 = vector.broadcast %cst : f32 to vector<8x128xf32>
    %cst_3 = arith.constant 0.000000e+00 : f32
    %3 = vector.broadcast %cst_3 : f32 to vector<8x128xf32>
    %c0_4 = arith.constant 0 : index
    %c0_5 = arith.constant 0 : index
    %c0_6 = arith.constant 0 : index
    %4 = vector.load %arg0[%c0_4, %c0_5, %c0_6] : memref<1x64x32xbf16, #tpu.memory_space<vmem>>, vector<1x64x32xbf16>
    %5 = vector.shape_cast %4 : vector<1x64x32xbf16> to vector<64x32xbf16>
    %cst_7 = arith.constant dense<0.000000e+00> : vector<64x512xf32>
    %6 = tpu.matmul %5, %0, %cst_7 {dimension_numbers = #tpu.dot_dimension_numbers<[1], [0], [0], [1], [0, 0, 1, 1], [], []>} : vector<64x32xbf16>, vector<32x512xbf16>, vector<64x512xf32> -> vector<64x512xf32>
    %c0_8 = arith.constant 0 : index
    %c0_9 = arith.constant 0 : index
    %7 = vector.load %arg8[%c0_8, %c0_9] : memref<64x512xf32, #tpu.memory_space<vmem>>, vector<64x512xf32>
    tpu.vector_store %arg8[%c0_8, %c0_9], %6 {strides = array<i32>} : memref<64x512xf32, #tpu.memory_space<vmem>>, vector<64x512xf32>,
    %c0_i32 = arith.constant 0 : i32
    %c8_i32 = arith.constant 8 : i32
    %8 = arith.muli %c0_i32, %c8_i32 : i32
    %9 = tpu.assume_multiple %8, 8 : i32
    %10 = arith.index_cast %9 : i32 to index
    %c0_10 = arith.constant 0 : index
    %11 = vector.load %arg8[%10, %c0_10] : memref<64x512xf32, #tpu.memory_space<vmem>>, vector<8x512xf32>
    %12 = arith.truncf %2 : vector<8x128xf32> to vector<8x128xbf16>
    %cst_11 = arith.constant dense<0.000000e+00> : vector<8x512xf32>
    %13 = tpu.matmul %12, %1, %cst_11 {dimension_numbers = #tpu.dot_dimension_numbers<[1], [0], [0], [1], [0, 0, 1, 1], [], []>} : vector<8x128xbf16>, vector<128x512xbf16>, vector<8x512xf32> -> vector<8x512xf32>
    %14 = arith.addf %11, %13 : vector<8x512xf32>
    %15 = vector.extract_strided_slice %14 {offsets = [0, 0], sizes = [8, 128], strides = [1, 1]} : vector<8x512xf32> to vector<8x128xf32>
    %cst_12 = arith.constant 0.000000e+00 : f32
    %16 = vector.broadcast %cst_12 : f32 to vector<8x128xf32>
    %17 = arith.subf %16, %15 : vector<8x128xf32>
    %18 = math.exp %17 : vector<8x128xf32>
    %cst_13 = arith.constant 1.000000e+00 : f32
    %19 = vector.broadcast %cst_13 : f32 to vector<8x128xf32>
    %20 = arith.addf %19, %18 : vector<8x128xf32>
    %21 = tpu.reciprocal %20 {approx = true} : vector<8x128xf32> -> vector<8x128xf32>
    %22 = vector.extract_strided_slice %14 {offsets = [0, 128], sizes = [8, 128], strides = [1, 1]} : vector<8x512xf32> to vector<8x128xf32>
    %cst_14 = arith.constant 0.000000e+00 : f32
    %23 = vector.broadcast %cst_14 : f32 to vector<8x128xf32>
    %24 = arith.subf %23, %22 : vector<8x128xf32>
    %25 = math.exp %24 : vector<8x128xf32>
    %cst_15 = arith.constant 1.000000e+00 : f32
    %26 = vector.broadcast %cst_15 : f32 to vector<8x128xf32>
    %27 = arith.addf %26, %25 : vector<8x128xf32>
    %28 = tpu.reciprocal %27 {approx = true} : vector<8x128xf32> -> vector<8x128xf32>
    %29 = vector.extract_strided_slice %14 {offsets = [0, 256], sizes = [8, 128], strides = [1, 1]} : vector<8x512xf32> to vector<8x128xf32>
    %30 = math.tanh %29 : vector<8x128xf32>
    %31 = vector.extract_strided_slice %14 {offsets = [0, 384], sizes = [8, 128], strides = [1, 1]} : vector<8x512xf32> to vector<8x128xf32>
    %cst_16 = arith.constant 0.000000e+00 : f32
    %32 = vector.broadcast %cst_16 : f32 to vector<8x128xf32>
    %33 = arith.subf %32, %31 : vector<8x128xf32>
    %34 = math.exp %33 : vector<8x128xf32>
    %cst_17 = arith.constant 1.000000e+00 : f32
    %35 = vector.broadcast %cst_17 : f32 to vector<8x128xf32>
    %36 = arith.addf %35, %34 : vector<8x128xf32>
    %37 = tpu.reciprocal %36 {approx = true} : vector<8x128xf32> -> vector<8x128xf32>
    %38 = arith.mulf %28, %3 : vector<8x128xf32>
    %39 = arith.mulf %21, %30 : vector<8x128xf32>
    %40 = arith.addf %38, %39 : vector<8x128xf32>
    %41 = math.tanh %40 : vector<8x128xf32>
    %42 = arith.mulf %37, %41 : vector<8x128xf32>
    %c1_i32 = arith.constant 1 : i32
    %c8_i32_18 = arith.constant 8 : i32
    %43 = arith.muli %c1_i32, %c8_i32_18 : i32
    %44 = tpu.assume_multiple %43, 8 : i32
    %45 = arith.index_cast %44 : i32 to index
    %c0_19 = arith.constant 0 : index
    %46 = vector.load %arg8[%45, %c0_19] : memref<64x512xf32, #tpu.memory_space<vmem>>, vector<8x512xf32>
    %47 = arith.truncf %42 : vector<8x128xf32> to vector<8x128xbf16>
    %cst_20 = arith.constant dense<0.000000e+00> : vector<8x512xf32>
    %48 = tpu.matmul %47, %1, %cst_20 {dimension_numbers = #tpu.dot_dimension_numbers<[1], [0], [0], [1], [0, 0, 1, 1], [], []>} : vector<8x128xbf16>, vector<128x512xbf16>, vector<8x512xf32> -> vector<8x512xf32>
    %49 = arith.addf %46, %48 : vector<8x512xf32>
    %50 = vector.extract_strided_slice %49 {offsets = [0, 0], sizes = [8, 128], strides = [1, 1]} : vector<8x512xf32> to vector<8x128xf32>
    %cst_21 = arith.constant 0.000000e+00 : f32
    %51 = vector.broadcast %cst_21 : f32 to vector<8x128xf32>
    %52 = arith.subf %51, %50 : vector<8x128xf32>
    %53 = math.exp %52 : vector<8x128xf32>
    %cst_22 = arith.constant 1.000000e+00 : f32
    %54 = vector.broadcast %cst_22 : f32 to vector<8x128xf32>
    %55 = arith.addf %54, %53 : vector<8x128xf32>
    %56 = tpu.reciprocal %55 {approx = true} : vector<8x128xf32> -> vector<8x128xf32>
    %57 = vector.extract_strided_slice %49 {offsets = [0, 128], sizes = [8, 128], strides = [1, 1]} : vector<8x512xf32> to vector<8x128xf32>
    %cst_23 = arith.constant 0.000000e+00 : f32
    %58 = vector.broadcast %cst_23 : f32 to vector<8x128xf32>
    %59 = arith.subf %58, %57 : vector<8x128xf32>
    %60 = math.exp %59 : vector<8x128xf32>
    %cst_24 = arith.constant 1.000000e+00 : f32
    %61 = vector.broadcast %cst_24 : f32 to vector<8x128xf32>
    %62 = arith.addf %61, %60 : vector<8x128xf32>
    %63 = tpu.reciprocal %62 {approx = true} : vector<8x128xf32> -> vector<8x128xf32>
    %64 = vector.extract_strided_slice %49 {offsets = [0, 256], sizes = [8, 128], strides = [1, 1]} : vector<8x512xf32> to vector<8x128xf32>
    %65 = math.tanh %64 : vector<8x128xf32>
    %66 = vector.extract_strided_slice %49 {offsets = [0, 384], sizes = [8, 128], strides = [1, 1]} : vector<8x512xf32> to vector<8x128xf32>
    %cst_25 = arith.constant 0.000000e+00 : f32
    %67 = vector.broadcast %cst_25 : f32 to vector<8x128xf32>
    %68 = arith.subf %67, %66 : vector<8x128xf32>
    %69 = math.exp %68 : vector<8x128xf32>
    %cst_26 = arith.constant 1.000000e+00 : f32
    %70 = vector.broadcast %cst_26 : f32 to vector<8x128xf32>
    %71 = arith.addf %70, %69 : vector<8x128xf32>
    %72 = tpu.reciprocal %71 {approx = true} : vector<8x128xf32> -> vector<8x128xf32>
    %73 = arith.mulf %63, %40 : vector<8x128xf32>
    %74 = arith.mulf %56, %65 : vector<8x128xf32>
    %75 = arith.addf %73, %74 : vector<8x128xf32>
    %76 = math.tanh %75 : vector<8x128xf32>
    %77 = arith.mulf %72, %76 : vector<8x128xf32>
    %c2_i32 = arith.constant 2 : i32
    %c8_i32_27 = arith.constant 8 : i32
    %78 = arith.muli %c2_i32, %c8_i32_27 : i32
    %79 = tpu.assume_multiple %78, 8 : i32
    %80 = arith.index_cast %79 : i32 to index
    %c0_28 = arith.constant 0 : index
    %81 = vector.load %arg8[%80, %c0_28] : memref<64x512xf32, #tpu.memory_space<vmem>>, vector<8x512xf32>
    %82 = arith.truncf %77 : vector<8x128xf32> to vector<8x128xbf16>
    %cst_29 = arith.constant dense<0.000000e+00> : vector<8x512xf32>
    %83 = tpu.matmul %82, %1, %cst_29 {dimension_numbers = #tpu.dot_dimension_numbers<[1], [0], [0], [1], [0, 0, 1, 1], [], []>} : vector<8x128xbf16>, vector<128x512xbf16>, vector<8x512xf32> -> vector<8x512xf32>
    %84 = arith.addf %81, %83 : vector<8x512xf32>
    %85 = vector.extract_strided_slice %84 {offsets = [0, 0], sizes = [8, 128], strides = [1, 1]} : vector<8x512xf32> to vector<8x128xf32>
    %cst_30 = arith.constant 0.000000e+00 : f32
    %86 = vector.broadcast %cst_30 : f32 to vector<8x128xf32>
    %87 = arith.subf %86, %85 : vector<8x128xf32>
    %88 = math.exp %87 : vector<8x128xf32>
    %cst_31 = arith.constant 1.000000e+00 : f32
    %89 = vector.broadcast %cst_31 : f32 to vector<8x128xf32>
    %90 = arith.addf %89, %88 : vector<8x128xf32>
    %91 = tpu.reciprocal %90 {approx = true} : vector<8x128xf32> -> vector<8x128xf32>
    %92 = vector.extract_strided_slice %84 {offsets = [0, 128], sizes = [8, 128], strides = [1, 1]} : vector<8x512xf32> to vector<8x128xf32>
    %cst_32 = arith.constant 0.000000e+00 : f32
    %93 = vector.broadcast %cst_32 : f32 to vector<8x128xf32>
    %94 = arith.subf %93, %92 : vector<8x128xf32>
    %95 = math.exp %94 : vector<8x128xf32>
    %cst_33 = arith.constant 1.000000e+00 : f32
    %96 = vector.broadcast %cst_33 : f32 to vector<8x128xf32>
    %97 = arith.addf %96, %95 : vector<8x128xf32>
    %98 = tpu.reciprocal %97 {approx = true} : vector<8x128xf32> -> vector<8x128xf32>
    %99 = vector.extract_strided_slice %84 {offsets = [0, 256], sizes = [8, 128], strides = [1, 1]} : vector<8x512xf32> to vector<8x128xf32>
    %100 = math.tanh %99 : vector<8x128xf32>
    %101 = vector.extract_strided_slice %84 {offsets = [0, 384], sizes = [8, 128], strides = [1, 1]} : vector<8x512xf32> to vector<8x128xf32>
    %cst_34 = arith.constant 0.000000e+00 : f32
    %102 = vector.broadcast %cst_34 : f32 to vector<8x128xf32>
    %103 = arith.subf %102, %101 : vector<8x128xf32>
    %104 = math.exp %103 : vector<8x128xf32>
    %cst_35 = arith.constant 1.000000e+00 : f32
    %105 = vector.broadcast %cst_35 : f32 to vector<8x128xf32>
    %106 = arith.addf %105, %104 : vector<8x128xf32>
    %107 = tpu.reciprocal %106 {approx = true} : vector<8x128xf32> -> vector<8x128xf32>
    %108 = arith.mulf %98, %75 : vector<8x128xf32>
    %109 = arith.mulf %91, %100 : vector<8x128xf32>
    %110 = arith.addf %108, %109 : vector<8x128xf32>
    %111 = math.tanh %110 : vector<8x128xf32>
    %112 = arith.mulf %107, %111 : vector<8x128xf32>
    %c3_i32 = arith.constant 3 : i32
    %c8_i32_36 = arith.constant 8 : i32
    %113 = arith.muli %c3_i32, %c8_i32_36 : i32
    %114 = tpu.assume_multiple %113, 8 : i32
    %115 = arith.index_cast %114 : i32 to index
    %c0_37 = arith.constant 0 : index
    %116 = vector.load %arg8[%115, %c0_37] : memref<64x512xf32, #tpu.memory_space<vmem>>, vector<8x512xf32>
    %117 = arith.truncf %112 : vector<8x128xf32> to vector<8x128xbf16>
    %cst_38 = arith.constant dense<0.000000e+00> : vector<8x512xf32>
    %118 = tpu.matmul %117, %1, %cst_38 {dimension_numbers = #tpu.dot_dimension_numbers<[1], [0], [0], [1], [0, 0, 1, 1], [], []>} : vector<8x128xbf16>, vector<128x512xbf16>, vector<8x512xf32> -> vector<8x512xf32>
    %119 = arith.addf %116, %118 : vector<8x512xf32>
    %120 = vector.extract_strided_slice %119 {offsets = [0, 0], sizes = [8, 128], strides = [1, 1]} : vector<8x512xf32> to vector<8x128xf32>
    %cst_39 = arith.constant 0.000000e+00 : f32
    %121 = vector.broadcast %cst_39 : f32 to vector<8x128xf32>
    %122 = arith.subf %121, %120 : vector<8x128xf32>
    %123 = math.exp %122 : vector<8x128xf32>
    %cst_40 = arith.constant 1.000000e+00 : f32
    %124 = vector.broadcast %cst_40 : f32 to vector<8x128xf32>
    %125 = arith.addf %124, %123 : vector<8x128xf32>
    %126 = tpu.reciprocal %125 {approx = true} : vector<8x128xf32> -> vector<8x128xf32>
    %127 = vector.extract_strided_slice %119 {offsets = [0, 128], sizes = [8, 128], strides = [1, 1]} : vector<8x512xf32> to vector<8x128xf32>
    %cst_41 = arith.constant 0.000000e+00 : f32
    %128 = vector.broadcast %cst_41 : f32 to vector<8x128xf32>
    %129 = arith.subf %128, %127 : vector<8x128xf32>
    %130 = math.exp %129 : vector<8x128xf32>
    %cst_42 = arith.constant 1.000000e+00 : f32
    %131 = vector.broadcast %cst_42 : f32 to vector<8x128xf32>
    %132 = arith.addf %131, %130 : vector<8x128xf32>
    %133 = tpu.reciprocal %132 {approx = true} : vector<8x128xf32> -> vector<8x128xf32>
    %134 = vector.extract_strided_slice %119 {offsets = [0, 256], sizes = [8, 128], strides = [1, 1]} : vector<8x512xf32> to vector<8x128xf32>
    %135 = math.tanh %134 : vector<8x128xf32>
    %136 = vector.extract_strided_slice %119 {offsets = [0, 384], sizes = [8, 128], strides = [1, 1]} : vector<8x512xf32> to vector<8x128xf32>
    %cst_43 = arith.constant 0.000000e+00 : f32
    %137 = vector.broadcast %cst_43 : f32 to vector<8x128xf32>
    %138 = arith.subf %137, %136 : vector<8x128xf32>
    %139 = math.exp %138 : vector<8x128xf32>
    %cst_44 = arith.constant 1.000000e+00 : f32
    %140 = vector.broadcast %cst_44 : f32 to vector<8x128xf32>
    %141 = arith.addf %140, %139 : vector<8x128xf32>
    %142 = tpu.reciprocal %141 {approx = true} : vector<8x128xf32> -> vector<8x128xf32>
    %143 = arith.mulf %133, %110 : vector<8x128xf32>
    %144 = arith.mulf %126, %135 : vector<8x128xf32>
    %145 = arith.addf %143, %144 : vector<8x128xf32>
    %146 = math.tanh %145 : vector<8x128xf32>
    %147 = arith.mulf %142, %146 : vector<8x128xf32>
    %c4_i32 = arith.constant 4 : i32
    %c8_i32_45 = arith.constant 8 : i32
    %148 = arith.muli %c4_i32, %c8_i32_45 : i32
    %149 = tpu.assume_multiple %148, 8 : i32
    %150 = arith.index_cast %149 : i32 to index
    %c0_46 = arith.constant 0 : index
    %151 = vector.load %arg8[%150, %c0_46] : memref<64x512xf32, #tpu.memory_space<vmem>>, vector<8x512xf32>
    %152 = arith.truncf %147 : vector<8x128xf32> to vector<8x128xbf16>
    %cst_47 = arith.constant dense<0.000000e+00> : vector<8x512xf32>
    %153 = tpu.matmul %152, %1, %cst_47 {dimension_numbers = #tpu.dot_dimension_numbers<[1], [0], [0], [1], [0, 0, 1, 1], [], []>} : vector<8x128xbf16>, vector<128x512xbf16>, vector<8x512xf32> -> vector<8x512xf32>
    %154 = arith.addf %151, %153 : vector<8x512xf32>
    %155 = vector.extract_strided_slice %154 {offsets = [0, 0], sizes = [8, 128], strides = [1, 1]} : vector<8x512xf32> to vector<8x128xf32>
    %cst_48 = arith.constant 0.000000e+00 : f32
    %156 = vector.broadcast %cst_48 : f32 to vector<8x128xf32>
    %157 = arith.subf %156, %155 : vector<8x128xf32>
    %158 = math.exp %157 : vector<8x128xf32>
    %cst_49 = arith.constant 1.000000e+00 : f32
    %159 = vector.broadcast %cst_49 : f32 to vector<8x128xf32>
    %160 = arith.addf %159, %158 : vector<8x128xf32>
    %161 = tpu.reciprocal %160 {approx = true} : vector<8x128xf32> -> vector<8x128xf32>
    %162 = vector.extract_strided_slice %154 {offsets = [0, 128], sizes = [8, 128], strides = [1, 1]} : vector<8x512xf32> to vector<8x128xf32>
    %cst_50 = arith.constant 0.000000e+00 : f32
    %163 = vector.broadcast %cst_50 : f32 to vector<8x128xf32>
    %164 = arith.subf %163, %162 : vector<8x128xf32>
    %165 = math.exp %164 : vector<8x128xf32>
    %cst_51 = arith.constant 1.000000e+00 : f32
    %166 = vector.broadcast %cst_51 : f32 to vector<8x128xf32>
    %167 = arith.addf %166, %165 : vector<8x128xf32>
    %168 = tpu.reciprocal %167 {approx = true} : vector<8x128xf32> -> vector<8x128xf32>
    %169 = vector.extract_strided_slice %154 {offsets = [0, 256], sizes = [8, 128], strides = [1, 1]} : vector<8x512xf32> to vector<8x128xf32>
    %170 = math.tanh %169 : vector<8x128xf32>
    %171 = vector.extract_strided_slice %154 {offsets = [0, 384], sizes = [8, 128], strides = [1, 1]} : vector<8x512xf32> to vector<8x128xf32>
    %cst_52 = arith.constant 0.000000e+00 : f32
    %172 = vector.broadcast %cst_52 : f32 to vector<8x128xf32>
    %173 = arith.subf %172, %171 : vector<8x128xf32>
    %174 = math.exp %173 : vector<8x128xf32>
    %cst_53 = arith.constant 1.000000e+00 : f32
    %175 = vector.broadcast %cst_53 : f32 to vector<8x128xf32>
    %176 = arith.addf %175, %174 : vector<8x128xf32>
    %177 = tpu.reciprocal %176 {approx = true} : vector<8x128xf32> -> vector<8x128xf32>
    %178 = arith.mulf %168, %145 : vector<8x128xf32>
    %179 = arith.mulf %161, %170 : vector<8x128xf32>
    %180 = arith.addf %178, %179 : vector<8x128xf32>
    %181 = math.tanh %180 : vector<8x128xf32>
    %182 = arith.mulf %177, %181 : vector<8x128xf32>
    %c5_i32 = arith.constant 5 : i32
    %c8_i32_54 = arith.constant 8 : i32
    %183 = arith.muli %c5_i32, %c8_i32_54 : i32
    %184 = tpu.assume_multiple %183, 8 : i32
    %185 = arith.index_cast %184 : i32 to index
    %c0_55 = arith.constant 0 : index
    %186 = vector.load %arg8[%185, %c0_55] : memref<64x512xf32, #tpu.memory_space<vmem>>, vector<8x512xf32>
    %187 = arith.truncf %182 : vector<8x128xf32> to vector<8x128xbf16>
    %cst_56 = arith.constant dense<0.000000e+00> : vector<8x512xf32>
    %188 = tpu.matmul %187, %1, %cst_56 {dimension_numbers = #tpu.dot_dimension_numbers<[1], [0], [0], [1], [0, 0, 1, 1], [], []>} : vector<8x128xbf16>, vector<128x512xbf16>, vector<8x512xf32> -> vector<8x512xf32>
    %189 = arith.addf %186, %188 : vector<8x512xf32>
    %190 = vector.extract_strided_slice %189 {offsets = [0, 0], sizes = [8, 128], strides = [1, 1]} : vector<8x512xf32> to vector<8x128xf32>
    %cst_57 = arith.constant 0.000000e+00 : f32
    %191 = vector.broadcast %cst_57 : f32 to vector<8x128xf32>
    %192 = arith.subf %191, %190 : vector<8x128xf32>
    %193 = math.exp %192 : vector<8x128xf32>
    %cst_58 = arith.constant 1.000000e+00 : f32
    %194 = vector.broadcast %cst_58 : f32 to vector<8x128xf32>
    %195 = arith.addf %194, %193 : vector<8x128xf32>
    %196 = tpu.reciprocal %195 {approx = true} : vector<8x128xf32> -> vector<8x128xf32>
    %197 = vector.extract_strided_slice %189 {offsets = [0, 128], sizes = [8, 128], strides = [1, 1]} : vector<8x512xf32> to vector<8x128xf32>
    %cst_59 = arith.constant 0.000000e+00 : f32
    %198 = vector.broadcast %cst_59 : f32 to vector<8x128xf32>
    %199 = arith.subf %198, %197 : vector<8x128xf32>
    %200 = math.exp %199 : vector<8x128xf32>
    %cst_60 = arith.constant 1.000000e+00 : f32
    %201 = vector.broadcast %cst_60 : f32 to vector<8x128xf32>
    %202 = arith.addf %201, %200 : vector<8x128xf32>
    %203 = tpu.reciprocal %202 {approx = true} : vector<8x128xf32> -> vector<8x128xf32>
    %204 = vector.extract_strided_slice %189 {offsets = [0, 256], sizes = [8, 128], strides = [1, 1]} : vector<8x512xf32> to vector<8x128xf32>
    %205 = math.tanh %204 : vector<8x128xf32>
    %206 = vector.extract_strided_slice %189 {offsets = [0, 384], sizes = [8, 128], strides = [1, 1]} : vector<8x512xf32> to vector<8x128xf32>
    %cst_61 = arith.constant 0.000000e+00 : f32
    %207 = vector.broadcast %cst_61 : f32 to vector<8x128xf32>
    %208 = arith.subf %207, %206 : vector<8x128xf32>
    %209 = math.exp %208 : vector<8x128xf32>
    %cst_62 = arith.constant 1.000000e+00 : f32
    %210 = vector.broadcast %cst_62 : f32 to vector<8x128xf32>
    %211 = arith.addf %210, %209 : vector<8x128xf32>
    %212 = tpu.reciprocal %211 {approx = true} : vector<8x128xf32> -> vector<8x128xf32>
    %213 = arith.mulf %203, %180 : vector<8x128xf32>
    %214 = arith.mulf %196, %205 : vector<8x128xf32>
    %215 = arith.addf %213, %214 : vector<8x128xf32>
    %216 = math.tanh %215 : vector<8x128xf32>
    %217 = arith.mulf %212, %216 : vector<8x128xf32>
    %c6_i32 = arith.constant 6 : i32
    %c8_i32_63 = arith.constant 8 : i32
    %218 = arith.muli %c6_i32, %c8_i32_63 : i32
    %219 = tpu.assume_multiple %218, 8 : i32
    %220 = arith.index_cast %219 : i32 to index
    %c0_64 = arith.constant 0 : index
    %221 = vector.load %arg8[%220, %c0_64] : memref<64x512xf32, #tpu.memory_space<vmem>>, vector<8x512xf32>
    %222 = arith.truncf %217 : vector<8x128xf32> to vector<8x128xbf16>
    %cst_65 = arith.constant dense<0.000000e+00> : vector<8x512xf32>
    %223 = tpu.matmul %222, %1, %cst_65 {dimension_numbers = #tpu.dot_dimension_numbers<[1], [0], [0], [1], [0, 0, 1, 1], [], []>} : vector<8x128xbf16>, vector<128x512xbf16>, vector<8x512xf32> -> vector<8x512xf32>
    %224 = arith.addf %221, %223 : vector<8x512xf32>
    %225 = vector.extract_strided_slice %224 {offsets = [0, 0], sizes = [8, 128], strides = [1, 1]} : vector<8x512xf32> to vector<8x128xf32>
    %cst_66 = arith.constant 0.000000e+00 : f32
    %226 = vector.broadcast %cst_66 : f32 to vector<8x128xf32>
    %227 = arith.subf %226, %225 : vector<8x128xf32>
    %228 = math.exp %227 : vector<8x128xf32>
    %cst_67 = arith.constant 1.000000e+00 : f32
    %229 = vector.broadcast %cst_67 : f32 to vector<8x128xf32>
    %230 = arith.addf %229, %228 : vector<8x128xf32>
    %231 = tpu.reciprocal %230 {approx = true} : vector<8x128xf32> -> vector<8x128xf32>
    %232 = vector.extract_strided_slice %224 {offsets = [0, 128], sizes = [8, 128], strides = [1, 1]} : vector<8x512xf32> to vector<8x128xf32>
    %cst_68 = arith.constant 0.000000e+00 : f32
    %233 = vector.broadcast %cst_68 : f32 to vector<8x128xf32>
    %234 = arith.subf %233, %232 : vector<8x128xf32>
    %235 = math.exp %234 : vector<8x128xf32>
    %cst_69 = arith.constant 1.000000e+00 : f32
    %236 = vector.broadcast %cst_69 : f32 to vector<8x128xf32>
    %237 = arith.addf %236, %235 : vector<8x128xf32>
    %238 = tpu.reciprocal %237 {approx = true} : vector<8x128xf32> -> vector<8x128xf32>
    %239 = vector.extract_strided_slice %224 {offsets = [0, 256], sizes = [8, 128], strides = [1, 1]} : vector<8x512xf32> to vector<8x128xf32>
    %240 = math.tanh %239 : vector<8x128xf32>
    %241 = vector.extract_strided_slice %224 {offsets = [0, 384], sizes = [8, 128], strides = [1, 1]} : vector<8x512xf32> to vector<8x128xf32>
    %cst_70 = arith.constant 0.000000e+00 : f32
    %242 = vector.broadcast %cst_70 : f32 to vector<8x128xf32>
    %243 = arith.subf %242, %241 : vector<8x128xf32>
    %244 = math.exp %243 : vector<8x128xf32>
    %cst_71 = arith.constant 1.000000e+00 : f32
    %245 = vector.broadcast %cst_71 : f32 to vector<8x128xf32>
    %246 = arith.addf %245, %244 : vector<8x128xf32>
    %247 = tpu.reciprocal %246 {approx = true} : vector<8x128xf32> -> vector<8x128xf32>
    %248 = arith.mulf %238, %215 : vector<8x128xf32>
    %249 = arith.mulf %231, %240 : vector<8x128xf32>
    %250 = arith.addf %248, %249 : vector<8x128xf32>
    %251 = math.tanh %250 : vector<8x128xf32>
    %252 = arith.mulf %247, %251 : vector<8x128xf32>
    %c7_i32 = arith.constant 7 : i32
    %c8_i32_72 = arith.constant 8 : i32
    %253 = arith.muli %c7_i32, %c8_i32_72 : i32
    %254 = tpu.assume_multiple %253, 8 : i32
    %255 = arith.index_cast %254 : i32 to index
    %c0_73 = arith.constant 0 : index
    %256 = vector.load %arg8[%255, %c0_73] : memref<64x512xf32, #tpu.memory_space<vmem>>, vector<8x512xf32>
    %257 = arith.truncf %252 : vector<8x128xf32> to vector<8x128xbf16>
    %cst_74 = arith.constant dense<0.000000e+00> : vector<8x512xf32>
    %258 = tpu.matmul %257, %1, %cst_74 {dimension_numbers = #tpu.dot_dimension_numbers<[1], [0], [0], [1], [0, 0, 1, 1], [], []>} : vector<8x128xbf16>, vector<128x512xbf16>, vector<8x512xf32> -> vector<8x512xf32>
    %259 = arith.addf %256, %258 : vector<8x512xf32>
    %260 = vector.extract_strided_slice %259 {offsets = [0, 0], sizes = [8, 128], strides = [1, 1]} : vector<8x512xf32> to vector<8x128xf32>
    %cst_75 = arith.constant 0.000000e+00 : f32
    %261 = vector.broadcast %cst_75 : f32 to vector<8x128xf32>
    %262 = arith.subf %261, %260 : vector<8x128xf32>
    %263 = math.exp %262 : vector<8x128xf32>
    %cst_76 = arith.constant 1.000000e+00 : f32
    %264 = vector.broadcast %cst_76 : f32 to vector<8x128xf32>
    %265 = arith.addf %264, %263 : vector<8x128xf32>
    %266 = tpu.reciprocal %265 {approx = true} : vector<8x128xf32> -> vector<8x128xf32>
    %267 = vector.extract_strided_slice %259 {offsets = [0, 128], sizes = [8, 128], strides = [1, 1]} : vector<8x512xf32> to vector<8x128xf32>
    %cst_77 = arith.constant 0.000000e+00 : f32
    %268 = vector.broadcast %cst_77 : f32 to vector<8x128xf32>
    %269 = arith.subf %268, %267 : vector<8x128xf32>
    %270 = math.exp %269 : vector<8x128xf32>
    %cst_78 = arith.constant 1.000000e+00 : f32
    %271 = vector.broadcast %cst_78 : f32 to vector<8x128xf32>
    %272 = arith.addf %271, %270 : vector<8x128xf32>
    %273 = tpu.reciprocal %272 {approx = true} : vector<8x128xf32> -> vector<8x128xf32>
    %274 = vector.extract_strided_slice %259 {offsets = [0, 256], sizes = [8, 128], strides = [1, 1]} : vector<8x512xf32> to vector<8x128xf32>
    %275 = math.tanh %274 : vector<8x128xf32>
    %276 = vector.extract_strided_slice %259 {offsets = [0, 384], sizes = [8, 128], strides = [1, 1]} : vector<8x512xf32> to vector<8x128xf32>
    %cst_79 = arith.constant 0.000000e+00 : f32
    %277 = vector.broadcast %cst_79 : f32 to vector<8x128xf32>
    %278 = arith.subf %277, %276 : vector<8x128xf32>
    %279 = math.exp %278 : vector<8x128xf32>
    %cst_80 = arith.constant 1.000000e+00 : f32
    %280 = vector.broadcast %cst_80 : f32 to vector<8x128xf32>
    %281 = arith.addf %280, %279 : vector<8x128xf32>
    %282 = tpu.reciprocal %281 {approx = true} : vector<8x128xf32> -> vector<8x128xf32>
    %283 = arith.mulf %273, %250 : vector<8x128xf32>
    %284 = arith.mulf %266, %275 : vector<8x128xf32>
    %285 = arith.addf %283, %284 : vector<8x128xf32>
    %286 = math.tanh %285 : vector<8x128xf32>
    %287 = arith.mulf %282, %286 : vector<8x128xf32>
    %c8_i32_81 = arith.constant 8 : i32
    %288 = arith.truncf %287 : vector<8x128xf32> to vector<8x128xbf16>
    %c0_82 = arith.constant 0 : index
    %c0_83 = arith.constant 0 : index
    %289 = vector.load %arg3[%c0_82, %c0_83] : memref<128x128xbf16, #tpu.memory_space<vmem>>, vector<128x128xbf16>
    %cst_84 = arith.constant dense<0.000000e+00> : vector<8x128xf32>
    %290 = tpu.matmul %288, %289, %cst_84 {dimension_numbers = #tpu.dot_dimension_numbers<[1], [0], [0], [1], [0, 0, 1, 1], [], []>} : vector<8x128xbf16>, vector<128x128xbf16>, vector<8x128xf32> -> vector<8x128xf32>
    %c0_85 = arith.constant 0 : index
    %c0_86 = arith.constant 0 : index
    %291 = vector.load %arg4[%c0_85, %c0_86] : memref<1x128xf32, #tpu.memory_space<vmem>>, vector<1x128xf32>
    %292 = vector.broadcast %291 : vector<1x128xf32> to vector<8x128xf32>
    %293 = arith.addf %290, %292 : vector<8x128xf32>
    %cst_87 = arith.constant 0.000000e+00 : f32
    %294 = vector.broadcast %cst_87 : f32 to vector<8x128xf32>
    %295 = arith.maximumf %293, %294 : vector<8x128xf32>
    %296 = arith.truncf %295 : vector<8x128xf32> to vector<8x128xbf16>
    %c0_88 = arith.constant 0 : index
    %c0_89 = arith.constant 0 : index
    %297 = vector.load %arg5[%c0_88, %c0_89] : memref<128x128xbf16, #tpu.memory_space<vmem>>, vector<128x128xbf16>
    %cst_90 = arith.constant dense<0.000000e+00> : vector<8x128xf32>
    %298 = tpu.matmul %296, %297, %cst_90 {dimension_numbers = #tpu.dot_dimension_numbers<[1], [0], [0], [1], [0, 0, 1, 1], [], []>} : vector<8x128xbf16>, vector<128x128xbf16>, vector<8x128xf32> -> vector<8x128xf32>
    %c0_91 = arith.constant 0 : index
    %c0_92 = arith.constant 0 : index
    %299 = vector.load %arg6[%c0_91, %c0_92] : memref<1x128xf32, #tpu.memory_space<vmem>>, vector<1x128xf32>
    %300 = vector.broadcast %299 : vector<1x128xf32> to vector<8x128xf32>
    %301 = arith.addf %298, %300 : vector<8x128xf32>
    %cst_93 = arith.constant 0.000000e+00 : f32
    %302 = vector.broadcast %cst_93 : f32 to vector<8x128xf32>
    %303 = arith.maximumf %301, %302 : vector<8x128xf32>
    %c0_94 = arith.constant 0 : index
    %c0_95 = arith.constant 0 : index
    %304 = vector.load %arg7[%c0_94, %c0_95] : memref<8x128xf32, #tpu.memory_space<vmem>>, vector<8x128xf32>
    tpu.vector_store %arg7[%c0_94, %c0_95], %303 {strides = array<i32>} : memref<8x128xf32, #tpu.memory_space<vmem>>, vector<8x128xf32>,
    return
  }
}

</mosaic_0001>

<bundles_post_ra>
// kernel: tpu_custom_call.1
= control target key start
LH: loop header
LB: loop body
LE: loop exit
PB: predicated region body
PF: predicated region fallthrough
CT: control target
= control target key end

     0   :  { %12 = vsyncpa [#allocation4], 0  ;;  %s2845_s0 = inlined_call_operand.vmem [shape: bf16[1,64,32], index: 0, kind: input, shape index: {}]   ;;  %s2846_s1 = inlined_call_operand.hbm [shape: bf16[32,512], index: 1, kind: input, shape index: {}]   ;;  %s2847_s2 = inlined_call_operand.hbm [shape: bf16[128,512], index: 2, kind: input, shape index: {}]   ;;  %s2848_s3 = inlined_call_operand.hbm [shape: bf16[128,128], index: 3, kind: input, shape index: {}]   ;;  %s2849_s4 = inlined_call_operand.vmem [shape: f32[1,128], index: 4, kind: input, shape index: {}]   ;;  %s2850_s5 = inlined_call_operand.vmem [shape: bf16[128,128], index: 5, kind: input, shape index: {}]   ;;  %s2851_s6 = inlined_call_operand.vmem [shape: f32[1,128], index: 6, kind: input, shape index: {}]   ;;  %s2852_s7 = inlined_call_operand.hbm [shape: f32[8,128], index: 7, kind: output, shape index: {}]  }
   0x1   :  { %13 = vsyncpa [#allocation7], 0 }
   0x2   :  { %14 = vsyncpa [#allocation5], 0  ;;  %s2170_s24 = smov [#allocation6]   ;;  %s2171_s26 = smov [#allocation3]  }
   0x3   :  { %s34_s25 = sshll.u32 %s2170_s24, 4  ;;  %s22_s27 = sshll.u32 %s2171_s26, 4  ;;  %s35_s25 = int_to_ptr.vmem [resolvable:$true] %s34_s25  ;;  %s2221_s27 = int_to_ptr.vmem [resolvable:$true] %s22_s27 }
   0x4   :  { %s2076_s30 = scalar_lea.hbm %s2847_s2, 4096 }
   0x5   :  { %p2077_p0 = scmp.ne.s32.totalorder %s2847_s2, %s2076_s30  ;;  %p2080_p1 = scmp.lt.u32.totalorder %s2076_s30, %s2847_s2 }
   0x7   :  { %p2082_p2 = pnand %p2080_p1, %p2077_p0 }
   0x9   :  { %2085 = shalt.err (!%p2082_p2)
}
   0xa   :  { %s2086_s12 = scalar_lea.vmem %s35_s25, 4096  ;;  %p2091_p4 = scmp.lt.s32.totalorder %s35_s25, %s35_s25 }
   0xb   :  { %p2087_p3 = scmp.ne.s32.totalorder %s35_s25, %s2086_s12  ;;  %p2092_p5 = scmp.lt.s32.totalorder %s2086_s12, %s2086_s12 }
   0xd   :  { %p2093_p6 = por %p2092_p5, %p2091_p4 }
   0xf   :  { %p2094_p7 = pnand %p2093_p6, %p2087_p3 }
  0x11   :  { %2097 = shalt.err (!%p2094_p7)
}
  0x12   :  { %s2172_s13 = smov 256   ;;  %s2173_s14 = smov 16  }
  0x13   :  { %40 = dma.hbm_to_vmem [thread:$0]  %s2847_s2, 4096, %s35_s25, [#allocation7], %s2172_s13, %s2172_s13, %s2173_s14  }
  0x14   :  { %s2098_s19 = scalar_lea.hbm %s2846_s1, 1024 }
  0x15   :  { %p2099_p8 = scmp.ne.s32.totalorder %s2846_s1, %s2098_s19  ;;  %p2102_p9 = scmp.lt.u32.totalorder %s2098_s19, %s2846_s1 }
  0x17   :  { %p2104_p10 = pnand %p2102_p9, %p2099_p8 }
  0x19   :  { %2107 = shalt.err (!%p2104_p10)
}
  0x1a   :  { %s2108_s24 = scalar_lea.vmem %s2221_s27, 1024  ;;  %p2113_p12 = scmp.lt.s32.totalorder %s2221_s27, %s2221_s27 }
  0x1b   :  { %p2109_p11 = scmp.ne.s32.totalorder %s2221_s27, %s2108_s24  ;;  %p2114_p13 = scmp.lt.s32.totalorder %s2108_s24, %s2108_s24 }
  0x1d   :  { %p2115_p0 = por %p2114_p13, %p2113_p12 }
  0x1f   :  { %p2116_p1 = pnand %p2115_p0, %p2109_p11 }
  0x21   :  { %2119 = shalt.err (!%p2116_p1)
}
  0x22   :  { %28 = dma.hbm_to_vmem [thread:$0]  %s2846_s1, 1024, %s2221_s27, [#allocation4], %s2172_s13, %s2172_s13, %s2173_s14  }
  0x23   :  { %s2174_s26 = smov [#allocation8]   ;;  %s2120_s8 = scalar_lea.hbm %s2848_s3, 1024 }
  0x24   :  { %s46_s28 = sshll.u32 %s2174_s26, 4  ;;  %p2121_p2 = scmp.ne.s32.totalorder %s2848_s3, %s2120_s8  ;;  %s47_s28 = int_to_ptr.vmem [resolvable:$true] %s46_s28 }
  0x25   :  { %p2124_p3 = scmp.lt.u32.totalorder %s2120_s8, %s2848_s3 }
  0x27   :  { %p2126_p4 = pnand %p2124_p3, %p2121_p2 }
  0x29   :  { %2129 = shalt.err (!%p2126_p4)
}
  0x2a   :  { %s2130_s15 = scalar_lea.vmem %s47_s28, 1024  ;;  %p2135_p6 = scmp.lt.s32.totalorder %s47_s28, %s47_s28 }
  0x2b   :  { %p2131_p5 = scmp.ne.s32.totalorder %s47_s28, %s2130_s15  ;;  %p2136_p7 = scmp.lt.s32.totalorder %s2130_s15, %s2130_s15 }
  0x2d   :  { %p2137_p8 = por %p2136_p7, %p2135_p6 }
  0x2f   :  { %p2138_p9 = pnand %p2137_p8, %p2131_p5 }
  0x31   :  { %2141 = shalt.err (!%p2138_p9)
}
  0x32   :  { %s2175_s1 = smov 64   ;;  %s2176_s27 = smov 4  }
  0x33   :  { %52 = dma.hbm_to_vmem [thread:$0]  %s2848_s3, 1024, %s47_s28, [#allocation7], %s2175_s1, %s2175_s1, %s2176_s27  }
  0x34   :  { %2164 = dma.done.wait [#allocation4], 1024  }
  0x35   :  { %2165 = vsyncadd [#allocation4], 4294966272 }
  0x36   :  { %2166 = dma.done.wait [#allocation7], 5120  }
  0x37   :  { %2167 = vsyncadd [#allocation7], 4294962176  ;;  %v2853_v0 = vmov 0   ;;  %v1836_v1 = vld [vmem:[#allocation3 + $0x4] ss:$16 sps:$4 sm:$0xff]   ;;  %vm177_vm0 = vcmask 261120  }
  0x38   :  { %222 = vmatprep.mubr.bf16.mxu0 %v2853_v0  ;;  %295 = vmatprep.mubr.bf16.mxu1 %v2853_v0  ;;  %v1838_v2 = vld [vmem:[#allocation3 + $0xc] ss:$16 sps:$4 sm:$0xff]   ;;  %v1840_v3 = vld [vmem:[#allocation3] ss:$16 sps:$4 sm:$0xff]   ;;  %v1841_v4 = vld [vmem:[#allocation3 + $0x8] ss:$16 sps:$4 sm:$0xff]  }
  0x39   :  { %190 = vmatprep.subr.bf16.mxu0 %v1836_v1  ;;  %263 = vmatprep.subr.bf16.mxu1 %v1838_v2  ;;  %v1842_v5 = vld [vmem:[#allocation3 + $0x24] ss:$16 sps:$4 sm:$0xff]   ;;  %v1844_v6 = vld [vmem:[#allocation3 + $0x2c] ss:$16 sps:$4 sm:$0xff]   ;;  %v1846_v7 = vld [vmem:[#allocation3 + $0x20] ss:$16 sps:$4 sm:$0xff]  }
  0x3a   :  { %191 = vmatpush1.bf16.msra.mxu0 %v1840_v3  ;;  %264 = vmatpush1.bf16.msra.mxu1 %v1841_v4  ;;  %v1847_v8 = vld [vmem:[#allocation3 + $0x28] ss:$16 sps:$4 sm:$0xff]   ;;  %v1848_v9 = vld [vmem:[%s2845_s0] sm:$0xff]   ;;  %v2271_v11 = vld [vmem:[#allocation6 + $0xc] ss:$16 sps:$4 sm:$0xff]   ;;  %vm2179_vm1 = vmmov 0  }
  0x3b   :  { %192 = vmatprep.subr.bf16.mxu0 %v1842_v5  ;;  %265 = vmatprep.subr.bf16.mxu1 %v1844_v6  ;;  %v2269_v10 = vld [vmem:[#allocation6 + $0x4] ss:$16 sps:$4 sm:$0xff]   ;;  %v2273_v12 = vld [vmem:[#allocation6] ss:$16 sps:$4 sm:$0xff]   ;;  %v2275_v13 = vld [vmem:[#allocation6 + $0x8] ss:$16 sps:$4 sm:$0xff]  }
  0x3c   :  { %v2278_v14 = vld [vmem:[#allocation6 + $0x24] ss:$16 sps:$4 sm:$0xff]   ;;  %v2281_v15 = vld [vmem:[#allocation6 + $0x2c] ss:$16 sps:$4 sm:$0xff]   ;;  %v2285_v16 = vld [vmem:[#allocation6 + $0x20] ss:$16 sps:$4 sm:$0xff]  }
  0x3d   :  { %v2289_v17 = vld [vmem:[#allocation6 + $0x28] ss:$16 sps:$4 sm:$0xff]   ;;  %v2293_v18 = vld [vmem:[#allocation6 + $0x44] ss:$16 sps:$4 sm:$0xff]   ;;  %v2300_v20 = vld [vmem:[#allocation6 + $0x4c] ss:$16 sps:$4 sm:$0xff]  }
  0x3e   :  { %193 = vmatpush1.bf16.msra.mxu0 %v1846_v7  ;;  %266 = vmatpush1.bf16.msra.mxu1 %v1847_v8  ;;  %v1861_v19 = vld [vmem:[%s2845_s0 + $0x8] sm:$0xff]   ;;  %v2302_v21 = vld [vmem:[#allocation6 + $0x40] ss:$16 sps:$4 sm:$0xff]   ;;  %v2310_v23 = vld [vmem:[#allocation6 + $0x64] ss:$16 sps:$4 sm:$0xff]   ;;  %s2180_s16 = smov [#allocation9]  }
  0x3f   :  { %535 = vmatprep.subr.bf16.mxu0 %v2269_v10  ;;  %576 = vmatprep.subr.bf16.mxu1 %v2271_v11  ;;  %v2306_v22 = vld [vmem:[#allocation6 + $0x48] ss:$16 sps:$4 sm:$0xff]   ;;  %v2312_v24 = vld [vmem:[#allocation6 + $0x6c] ss:$16 sps:$4 sm:$0xff]   ;;  %v2316_v25 = vld [vmem:[#allocation6 + $0x60] ss:$16 sps:$4 sm:$0xff]  }
  0x40   :  { %v2320_v26 = vld [vmem:[#allocation6 + $0x68] ss:$16 sps:$4 sm:$0xff]   ;;  %v2324_v27 = vld [vmem:[#allocation6 + $0x84] ss:$16 sps:$4 sm:$0xff]   ;;  %v2326_v28 = vld [vmem:[#allocation6 + $0x8c] ss:$16 sps:$4 sm:$0xff]  }
  0x41   :  { %1709 = vmatmul.mubr.msk.bf16.vlgmr.msra.gmra.mrb[0].mxu0 %vm177_vm0, %v1848_v9  ;;  %1713 = vmatmul.mubr.msk.bf16.vlgmr.msra.gmra.mrb[0].mxu1 %vm177_vm0, %v1848_v9  ;;  %v1874_v29 = vld [vmem:[%s2845_s0 + $0x10] sm:$0xff]   ;;  %v2335_v31 = vld [vmem:[#allocation6 + $0x88] ss:$16 sps:$4 sm:$0xff]   ;;  %v2343_v33 = vld [vmem:[#allocation6 + $0xac] ss:$16 sps:$4 sm:$0xff]  }
  0x42   :  { %536 = vmatpush1.bf16.msra.mxu0 %v2273_v12  ;;  %577 = vmatpush1.bf16.msra.mxu1 %v2275_v13  ;;  %v2333_v30 = vld [vmem:[#allocation6 + $0x80] ss:$16 sps:$4 sm:$0xff]   ;;  %v2339_v32 = vld [vmem:[#allocation6 + $0xa4] ss:$16 sps:$4 sm:$0xff]   ;;  %v2349_v35 = vld [vmem:[#allocation6 + $0xa8] ss:$16 sps:$4 sm:$0xff]  }
  0x43   :  { %537 = vmatprep.subr.bf16.mxu0 %v2278_v14  ;;  %578 = vmatprep.subr.bf16.mxu1 %v2281_v15  ;;  %v2347_v34 = vld [vmem:[#allocation6 + $0xa0] ss:$16 sps:$4 sm:$0xff]   ;;  %v2353_v36 = vld [vmem:[#allocation6 + $0xc4] ss:$16 sps:$4 sm:$0xff]   ;;  %v1887_v37 = vld [vmem:[%s2845_s0 + $0x18] sm:$0xff]  }
  0x44   :  { %232 = vmatprep.mubr.bf16.mxu0 %v2853_v0  ;;  %305 = vmatprep.mubr.bf16.mxu1 %v2853_v0  ;;  %v2360_v38 = vld [vmem:[#allocation6 + $0xcc] ss:$16 sps:$4 sm:$0xff]   ;;  %v2364_v39 = vld [vmem:[#allocation6 + $0xc0] ss:$16 sps:$4 sm:$0xff]   ;;  %v2366_v40 = vld [vmem:[#allocation6 + $0xc8] ss:$16 sps:$4 sm:$0xff]  }
  0x45   :  { %v2368_v41 = vld [vmem:[#allocation6 + $0xe4] ss:$16 sps:$4 sm:$0xff]   ;;  %v2370_v42 = vld [vmem:[#allocation6 + $0xec] ss:$16 sps:$4 sm:$0xff]   ;;  %v2376_v43 = vld [vmem:[#allocation6 + $0xe0] ss:$16 sps:$4 sm:$0xff]  }
  0x46   :  { %538 = vmatpush1.bf16.msra.mxu0 %v2285_v16  ;;  %579 = vmatpush1.bf16.msra.mxu1 %v2289_v17  ;;  %v2378_v44 = vld [vmem:[#allocation6 + $0xe8] ss:$16 sps:$4 sm:$0xff]  }
  0x47   :  { %539 = vmatprep.subr.bf16.mxu0 %v2293_v18  ;;  %580 = vmatprep.subr.bf16.mxu1 %v2300_v20 }
  0x49   :  { %1710 = vmatmul.mubr.msk.bf16.gmra.mrb[4].mxu0 %vm177_vm0, %v1861_v19  ;;  %1714 = vmatmul.mubr.msk.bf16.gmra.mrb[4].mxu1 %vm177_vm0, %v1861_v19 }
  0x4a   :  { %540 = vmatpush1.bf16.msra.mxu0 %v2302_v21  ;;  %581 = vmatpush1.bf16.msra.mxu1 %v2306_v22 }
  0x4b   :  { %541 = vmatprep.subr.bf16.mxu0 %v2310_v23  ;;  %582 = vmatprep.subr.bf16.mxu1 %v2312_v24 }
  0x4c   :  { %242 = vmatprep.mubr.bf16.mxu0 %v2853_v0  ;;  %315 = vmatprep.mubr.bf16.mxu1 %v2853_v0 }
  0x4e   :  { %542 = vmatpush1.bf16.msra.mxu0 %v2316_v25  ;;  %583 = vmatpush1.bf16.msra.mxu1 %v2320_v26 }
  0x4f   :  { %543 = vmatprep.subr.bf16.mxu0 %v2324_v27  ;;  %584 = vmatprep.subr.bf16.mxu1 %v2326_v28 }
  0x51   :  { %1711 = vmatmul.mubr.msk.bf16.gmra.mrb[8].mxu0 %vm177_vm0, %v1874_v29  ;;  %1715 = vmatmul.mubr.msk.bf16.gmra.mrb[8].mxu1 %vm177_vm0, %v1874_v29 }
  0x52   :  { %544 = vmatpush1.bf16.msra.mxu0 %v2333_v30  ;;  %585 = vmatpush1.bf16.msra.mxu1 %v2335_v31 }
  0x53   :  { %545 = vmatprep.subr.bf16.mxu0 %v2339_v32  ;;  %586 = vmatprep.subr.bf16.mxu1 %v2343_v33 }
  0x54   :  { %252 = vmatprep.mubr.bf16.mxu0 %v2853_v0  ;;  %325 = vmatprep.mubr.bf16.mxu1 %v2853_v0 }
  0x56   :  { %546 = vmatpush1.bf16.msra.mxu0 %v2347_v34  ;;  %587 = vmatpush1.bf16.msra.mxu1 %v2349_v35 }
  0x57   :  { %547 = vmatprep.subr.bf16.mxu0 %v2353_v36  ;;  %588 = vmatprep.subr.bf16.mxu1 %v2360_v38 }
  0x59   :  { %1712 = vmatmul.mubr.msk.bf16.gmra.mrb[12].mxu0 %vm177_vm0, %v1887_v37  ;;  %1716 = vmatmul.mubr.msk.bf16.gmra.mrb[12].mxu1 %vm177_vm0, %v1887_v37 }
  0x5a   :  { %548 = vmatpush1.bf16.msra.mxu0 %v2364_v39  ;;  %589 = vmatpush1.bf16.msra.mxu1 %v2366_v40 }
  0x5b   :  { %549 = vmatprep.subr.bf16.mxu0 %v2368_v41  ;;  %590 = vmatprep.subr.bf16.mxu1 %v2370_v42 }
  0x5c   :  { %567 = vmatprep.mubr.bf16.mxu0 %v2853_v0  ;;  %608 = vmatprep.mubr.bf16.mxu1 %v2853_v0 }
  0x5e   :  { %550 = vmatpush1.bf16.msra.mxu0 %v2376_v43  ;;  %591 = vmatpush1.bf16.msra.mxu1 %v2378_v44 }
  0x5f   :  { %650 = vmatprep.subr.bf16.mxu0 %v2269_v10  ;;  %691 = vmatprep.subr.bf16.mxu1 %v2271_v11 }
  0x61   :  { %568 = vmatmul.mubr.bf16.vlgmr.msra.gmra.mrb[16].mxu0 %v2853_v0  ;;  %609 = vmatmul.mubr.bf16.vlgmr.msra.gmra.mrb[16].mxu1 %v2853_v0 }
  0x62   :  { %651 = vmatpush1.bf16.msra.mxu0 %v2273_v12  ;;  %692 = vmatpush1.bf16.msra.mxu1 %v2275_v13 }
  0x63   :  { %652 = vmatprep.subr.bf16.mxu0 %v2278_v14  ;;  %693 = vmatprep.subr.bf16.mxu1 %v2281_v15 }
  0x64   :  { %682 = vmatprep.mubr.bf16.mxu0 %v2853_v0  ;;  %723 = vmatprep.mubr.bf16.mxu1 %v2853_v0 }
  0x66   :  { %653 = vmatpush1.bf16.msra.mxu0 %v2285_v16  ;;  %694 = vmatpush1.bf16.msra.mxu1 %v2289_v17 }
  0x67   :  { %654 = vmatprep.subr.bf16.mxu0 %v2293_v18  ;;  %695 = vmatprep.subr.bf16.mxu1 %v2300_v20 }
  0x6a   :  { %655 = vmatpush1.bf16.msra.mxu0 %v2302_v21  ;;  %696 = vmatpush1.bf16.msra.mxu1 %v2306_v22 }
  0x6b   :  { %656 = vmatprep.subr.bf16.mxu0 %v2310_v23  ;;  %697 = vmatprep.subr.bf16.mxu1 %v2312_v24 }
  0x6e   :  { %657 = vmatpush1.bf16.msra.mxu0 %v2316_v25  ;;  %698 = vmatpush1.bf16.msra.mxu1 %v2320_v26 }
  0x6f   :  { %658 = vmatprep.subr.bf16.mxu0 %v2324_v27  ;;  %699 = vmatprep.subr.bf16.mxu1 %v2326_v28 }
  0x72   :  { %659 = vmatpush1.bf16.msra.mxu0 %v2333_v30  ;;  %700 = vmatpush1.bf16.msra.mxu1 %v2335_v31 }
  0x73   :  { %660 = vmatprep.subr.bf16.mxu0 %v2339_v32  ;;  %701 = vmatprep.subr.bf16.mxu1 %v2343_v33 }
  0x76   :  { %661 = vmatpush1.bf16.msra.mxu0 %v2347_v34  ;;  %702 = vmatpush1.bf16.msra.mxu1 %v2349_v35 }
  0x77   :  { %662 = vmatprep.subr.bf16.mxu0 %v2353_v36  ;;  %703 = vmatprep.subr.bf16.mxu1 %v2360_v38 }
  0x7a   :  { %663 = vmatpush1.bf16.msra.mxu0 %v2364_v39  ;;  %704 = vmatpush1.bf16.msra.mxu1 %v2366_v40 }
  0x7b   :  { %664 = vmatprep.subr.bf16.mxu0 %v2368_v41  ;;  %705 = vmatprep.subr.bf16.mxu1 %v2370_v42 }
  0x7e   :  { %665 = vmatpush1.bf16.msra.mxu0 %v2376_v43  ;;  %706 = vmatpush1.bf16.msra.mxu1 %v2378_v44 }
  0x7f   :  { %765 = vmatprep.subr.bf16.mxu0 %v2269_v10  ;;  %806 = vmatprep.subr.bf16.mxu1 %v2271_v11 }
 0x114   :  { %v224_v45 = vpop.f32.mrb[0].mxu0  ;;  %v297_v46 = vpop.f32.mrb[0].mxu1 }
 0x115   :  { %v226_v47 = vpop.f32.mrb[1].mxu0  ;;  %v299_v48 = vpop.f32.mrb[1].mxu1 }
 0x116   :  { %v2428_v49 = vpop.f32.mrb[2].mxu0  ;;  %v2430_v50 = vpop.f32.mrb[2].mxu1 }
 0x117   :  { %v2432_v51 = vpop.f32.mrb[3].mxu0  ;;  %v2434_v52 = vpop.f32.mrb[3].mxu1 }
 0x11c   :  { %v2436_v53 = vpop.f32.mrb[4].mxu0  ;;  %v2438_v54 = vpop.f32.mrb[4].mxu1 }
 0x11d   :  { %v2440_v55 = vpop.f32.mrb[5].mxu0  ;;  %v2442_v56 = vpop.f32.mrb[5].mxu1 }
 0x11e   :  { %v2444_v57 = vpop.f32.mrb[6].mxu0  ;;  %v2446_v58 = vpop.f32.mrb[6].mxu1 }
 0x11f   :  { %2855 = vst [vmem:[#allocation13_spill] sm:$0xff] %v2444_v57  ;;  %2856 = vst [vmem:[#allocation14_spill] sm:$0xff] %v2446_v58  ;;  %v2448_v59 = vpop.f32.mrb[7].mxu0  ;;  %v2450_v60 = vpop.f32.mrb[7].mxu1 }
 0x120   :  { %2857 = vst [vmem:[#allocation15_spill] sm:$0xff] %v2448_v59  ;;  %2858 = vst [vmem:[#allocation16_spill] sm:$0xff] %v2450_v60 }
 0x124   :  { %v2452_v61 = vpop.f32.mrb[8].mxu0  ;;  %v2454_v62 = vpop.f32.mrb[8].mxu1 }
 0x125   :  { %2859 = vst [vmem:[#allocation17_spill] sm:$0xff] %v2452_v61  ;;  %2860 = vst [vmem:[#allocation18_spill] sm:$0xff] %v2454_v62  ;;  %v2456_v63 = vpop.f32.mrb[9].mxu0  ;;  %v2458_v1 = vpop.f32.mrb[9].mxu1 }
 0x126   :  { %2861 = vst [vmem:[#allocation19_spill] sm:$0xff] %v2456_v63  ;;  %2862 = vst [vmem:[#allocation20_spill] sm:$0xff] %v2458_v1  ;;  %v2460_v2 = vpop.f32.mrb[10].mxu0  ;;  %v2462_v3 = vpop.f32.mrb[10].mxu1 }
 0x127   :  { %2863 = vst [vmem:[#allocation21_spill] sm:$0xff] %v2460_v2  ;;  %2864 = vst [vmem:[#allocation22_spill] sm:$0xff] %v2462_v3  ;;  %v2464_v4 = vpop.f32.mrb[11].mxu0  ;;  %v2466_v5 = vpop.f32.mrb[11].mxu1 }
 0x128   :  { %2865 = vst [vmem:[#allocation23_spill] sm:$0xff] %v2464_v4  ;;  %2866 = vst [vmem:[#allocation24_spill] sm:$0xff] %v2466_v5 }
 0x12c   :  { %v2468_v6 = vpop.f32.mrb[12].mxu0  ;;  %v2470_v7 = vpop.f32.mrb[12].mxu1 }
 0x12d   :  { %2867 = vst [vmem:[#allocation25_spill] sm:$0xff] %v2468_v6  ;;  %2868 = vst [vmem:[#allocation26_spill] sm:$0xff] %v2470_v7  ;;  %v2472_v8 = vpop.f32.mrb[13].mxu0  ;;  %v2474_v9 = vpop.f32.mrb[13].mxu1 }
 0x12e   :  { %2869 = vst [vmem:[#allocation27_spill] sm:$0xff] %v2472_v8  ;;  %2870 = vst [vmem:[#allocation28_spill] sm:$0xff] %v2474_v9  ;;  %v2476_v19 = vpop.f32.mrb[14].mxu0  ;;  %v2478_v29 = vpop.f32.mrb[14].mxu1 }
 0x12f   :  { %2871 = vst [vmem:[#allocation29_spill] sm:$0xff] %v2476_v19  ;;  %2872 = vst [vmem:[#allocation30_spill] sm:$0xff] %v2478_v29  ;;  %v2480_v37 = vpop.f32.mrb[15].mxu0  ;;  %v2482_v0 = vpop.f32.mrb[15].mxu1 }
 0x130   :  { %2873 = vst [vmem:[#allocation31_spill] sm:$0xff] %v2480_v37  ;;  %2874 = vst [vmem:[#allocation32_spill] sm:$0xff] %v2482_v0 }
 0x134   :  { %v569_v3 = vpop.f32.mrb[16].mxu0  ;;  %v610_v4 = vpop.f32.mrb[16].mxu1 }
 0x135   :  { %v617_v2 = vadd.f32 %v569_v3, %v224_v45  ;;  %v619_v5 = vadd.f32 %v610_v4, %v297_v46  ;;  %v571_v1 = vpop.f32.mrb[17].mxu0  ;;  %v612_v6 = vpop.f32.mrb[17].mxu1 }
 0x136   :  { %v618_v63 = vadd.f32 %v571_v1, %v226_v47  ;;  %v620_v7 = vadd.f32 %v612_v6, %v299_v48  ;;  %v573_v62 = vpop.f32.mrb[18].mxu0  ;;  %v614_v8 = vpop.f32.mrb[18].mxu1 }
 0x137   :  { %v621_v61 = vsub.f32 0.0, %v617_v2  ;;  %v574_v9 = vpop.f32.mrb[19].mxu0  ;;  %v615_v60 = vpop.f32.mrb[19].mxu1 }
 0x138   :  { %v626_v19 = vsub.f32 0.0, %v618_v63  ;;  %v632_v37 = vsub.f32 0.0, %v620_v7 }
 0x139   :  { %v622_v59 = vmul.f32 1.442695, %v621_v61 }
 0x13a   :  { %v627_v29 = vmul.f32 1.442695, %v626_v19  ;;  %v633_v0 = vmul.f32 1.442695, %v632_v37 }
 0x13b   :  { %1916 = vpow2.f32 %v622_v59 }
 0x13c   :  { %1918 = vpow2.f32 %v627_v29 }
 0x13d   :  { %1920 = vpow2.f32 %v633_v0 }
 0x13e   :  { %1922 = vtanh.f32 %v619_v5 }
 0x145   :  { %v1917_v58 = vpop.eup %1916 }
 0x146   :  { %v1919_v57 = vpop.eup %1918  ;;  %v624_v45 = vadd.f32 1.0, %v1917_v58 }
 0x147   :  { %v629_v46 = vadd.f32 1.0, %v1919_v57  ;;  %v1921_v47 = vpop.eup %1920  ;;  %v2875_v57 = vmov 0  }
 0x148   :  { %1924 = vrcp.f32 %v624_v45  ;;  %v1923_v48 = vpop.eup %1922  ;;  %v635_v63 = vadd.f32 1.0, %v1921_v47 }
 0x149   :  { %1926 = vrcp.f32 %v629_v46 }
 0x14a   :  { %1928 = vrcp.f32 %v635_v63 }
 0x152   :  { %v1925_v62 = vpop.eup %1924 }
 0x153   :  { %v1927_v1 = vpop.eup %1926  ;;  %v638_v60 = vmul.f32 %v1925_v62, %v1923_v48 }
 0x154   :  { %v637_v61 = vmul.f32 0.0, %v1927_v1  ;;  %v1929_v59 = vpop.eup %1928 }
 0x156   :  { %v2484_v2 = vadd.f32 %v638_v60, %v637_v61 }
 0x158   :  { %1930 = vtanh.f32 %v2484_v2 }
 0x162   :  { %v1931_v3 = vpop.eup %1930 }
 0x163   :  { %v641_v58 = vmul.f32 %v1931_v3, %v1929_v59 }
 0x165   :  { %v649_v0 = vpack.c.bf16 %v641_v58, %v641_v58 }
 0x167   :  { %683 = vmatmul.mubr.bf16.vlgmr.msra.gmra.mrb[20].mxu0 %v649_v0  ;;  %724 = vmatmul.mubr.bf16.vlgmr.msra.gmra.mrb[20].mxu1 %v649_v0 }
 0x168   :  { %766 = vmatpush1.bf16.msra.mxu0 %v2273_v12  ;;  %807 = vmatpush1.bf16.msra.mxu1 %v2275_v13 }
 0x169   :  { %767 = vmatprep.subr.bf16.mxu0 %v2278_v14  ;;  %808 = vmatprep.subr.bf16.mxu1 %v2281_v15 }
 0x16a   :  { %797 = vmatprep.mubr.bf16.mxu0 %v2875_v57  ;;  %838 = vmatprep.mubr.bf16.mxu1 %v2875_v57 }
 0x16c   :  { %768 = vmatpush1.bf16.msra.mxu0 %v2285_v16  ;;  %809 = vmatpush1.bf16.msra.mxu1 %v2289_v17 }
 0x16d   :  { %769 = vmatprep.subr.bf16.mxu0 %v2293_v18  ;;  %810 = vmatprep.subr.bf16.mxu1 %v2300_v20 }
 0x170   :  { %770 = vmatpush1.bf16.msra.mxu0 %v2302_v21  ;;  %811 = vmatpush1.bf16.msra.mxu1 %v2306_v22 }
 0x171   :  { %771 = vmatprep.subr.bf16.mxu0 %v2310_v23  ;;  %812 = vmatprep.subr.bf16.mxu1 %v2312_v24 }
 0x174   :  { %772 = vmatpush1.bf16.msra.mxu0 %v2316_v25  ;;  %813 = vmatpush1.bf16.msra.mxu1 %v2320_v26 }
 0x175   :  { %773 = vmatprep.subr.bf16.mxu0 %v2324_v27  ;;  %814 = vmatprep.subr.bf16.mxu1 %v2326_v28 }
 0x178   :  { %774 = vmatpush1.bf16.msra.mxu0 %v2333_v30  ;;  %815 = vmatpush1.bf16.msra.mxu1 %v2335_v31 }
 0x179   :  { %775 = vmatprep.subr.bf16.mxu0 %v2339_v32  ;;  %816 = vmatprep.subr.bf16.mxu1 %v2343_v33 }
 0x17c   :  { %776 = vmatpush1.bf16.msra.mxu0 %v2347_v34  ;;  %817 = vmatpush1.bf16.msra.mxu1 %v2349_v35 }
 0x17d   :  { %777 = vmatprep.subr.bf16.mxu0 %v2353_v36  ;;  %818 = vmatprep.subr.bf16.mxu1 %v2360_v38 }
 0x180   :  { %778 = vmatpush1.bf16.msra.mxu0 %v2364_v39  ;;  %819 = vmatpush1.bf16.msra.mxu1 %v2366_v40 }
 0x181   :  { %779 = vmatprep.subr.bf16.mxu0 %v2368_v41  ;;  %820 = vmatprep.subr.bf16.mxu1 %v2370_v42 }
 0x184   :  { %780 = vmatpush1.bf16.msra.mxu0 %v2376_v43  ;;  %821 = vmatpush1.bf16.msra.mxu1 %v2378_v44 }
 0x185   :  { %880 = vmatprep.subr.bf16.mxu0 %v2269_v10  ;;  %921 = vmatprep.subr.bf16.mxu1 %v2271_v11 }
 0x23a   :  { %v684_v4 = vpop.f32.mrb[20].mxu0  ;;  %v725_v5 = vpop.f32.mrb[20].mxu1 }
 0x23b   :  { %v732_v6 = vadd.f32 %v684_v4, %v2428_v49  ;;  %v734_v7 = vadd.f32 %v725_v5, %v2430_v50  ;;  %v686_v8 = vpop.f32.mrb[21].mxu0  ;;  %v727_v9 = vpop.f32.mrb[21].mxu1 }
 0x23c   :  { %v733_v19 = vadd.f32 %v686_v8, %v2432_v51  ;;  %v735_v29 = vadd.f32 %v727_v9, %v2434_v52  ;;  %v688_v37 = vpop.f32.mrb[22].mxu0  ;;  %v729_v45 = vpop.f32.mrb[22].mxu1 }
 0x23d   :  { %v736_v46 = vsub.f32 0.0, %v732_v6  ;;  %v689_v47 = vpop.f32.mrb[23].mxu0  ;;  %v730_v48 = vpop.f32.mrb[23].mxu1 }
 0x23e   :  { %v741_v62 = vsub.f32 0.0, %v733_v19  ;;  %v747_v63 = vsub.f32 0.0, %v735_v29 }
 0x23f   :  { %v737_v1 = vmul.f32 1.442695, %v736_v46 }
 0x240   :  { %v742_v60 = vmul.f32 1.442695, %v741_v62  ;;  %v748_v49 = vmul.f32 1.442695, %v747_v63 }
 0x241   :  { %1932 = vpow2.f32 %v737_v1 }
 0x242   :  { %1934 = vpow2.f32 %v742_v60 }
 0x243   :  { %1936 = vpow2.f32 %v748_v49 }
 0x244   :  { %1938 = vtanh.f32 %v734_v7 }
 0x24b   :  { %v1933_v61 = vpop.eup %1932 }
 0x24c   :  { %v1935_v50 = vpop.eup %1934  ;;  %v739_v59 = vadd.f32 1.0, %v1933_v61 }
 0x24d   :  { %v744_v51 = vadd.f32 1.0, %v1935_v50  ;;  %v1937_v52 = vpop.eup %1936 }
 0x24e   :  { %1940 = vrcp.f32 %v739_v59  ;;  %v1939_v3 = vpop.eup %1938  ;;  %v750_v5 = vadd.f32 1.0, %v1937_v52 }
 0x24f   :  { %1942 = vrcp.f32 %v744_v51 }
 0x250   :  { %1944 = vrcp.f32 %v750_v5 }
 0x258   :  { %v1941_v58 = vpop.eup %1940 }
 0x259   :  { %v1943_v0 = vpop.eup %1942  ;;  %v753_v4 = vmul.f32 %v1941_v58, %v1939_v3 }
 0x25a   :  { %v752_v6 = vmul.f32 %v1943_v0, %v2484_v2  ;;  %v1945_v9 = vpop.eup %1944 }
 0x25c   :  { %v2526_v8 = vadd.f32 %v753_v4, %v752_v6 }
 0x25e   :  { %1946 = vtanh.f32 %v2526_v8 }
 0x268   :  { %v1947_v19 = vpop.eup %1946 }
 0x269   :  { %v756_v29 = vmul.f32 %v1947_v19, %v1945_v9 }
 0x26b   :  { %v764_v7 = vpack.c.bf16 %v756_v29, %v756_v29 }
 0x26d   :  { %798 = vmatmul.mubr.bf16.vlgmr.msra.gmra.mrb[24].mxu0 %v764_v7  ;;  %839 = vmatmul.mubr.bf16.vlgmr.msra.gmra.mrb[24].mxu1 %v764_v7 }
 0x26e   :  { %881 = vmatpush1.bf16.msra.mxu0 %v2273_v12  ;;  %922 = vmatpush1.bf16.msra.mxu1 %v2275_v13 }
 0x26f   :  { %882 = vmatprep.subr.bf16.mxu0 %v2278_v14  ;;  %923 = vmatprep.subr.bf16.mxu1 %v2281_v15 }
 0x270   :  { %912 = vmatprep.mubr.bf16.mxu0 %v2875_v57  ;;  %953 = vmatprep.mubr.bf16.mxu1 %v2875_v57 }
 0x272   :  { %883 = vmatpush1.bf16.msra.mxu0 %v2285_v16  ;;  %924 = vmatpush1.bf16.msra.mxu1 %v2289_v17 }
 0x273   :  { %884 = vmatprep.subr.bf16.mxu0 %v2293_v18  ;;  %925 = vmatprep.subr.bf16.mxu1 %v2300_v20 }
 0x276   :  { %885 = vmatpush1.bf16.msra.mxu0 %v2302_v21  ;;  %926 = vmatpush1.bf16.msra.mxu1 %v2306_v22 }
 0x277   :  { %886 = vmatprep.subr.bf16.mxu0 %v2310_v23  ;;  %927 = vmatprep.subr.bf16.mxu1 %v2312_v24 }
 0x27a   :  { %887 = vmatpush1.bf16.msra.mxu0 %v2316_v25  ;;  %928 = vmatpush1.bf16.msra.mxu1 %v2320_v26 }
 0x27b   :  { %888 = vmatprep.subr.bf16.mxu0 %v2324_v27  ;;  %929 = vmatprep.subr.bf16.mxu1 %v2326_v28 }
 0x27e   :  { %889 = vmatpush1.bf16.msra.mxu0 %v2333_v30  ;;  %930 = vmatpush1.bf16.msra.mxu1 %v2335_v31 }
 0x27f   :  { %890 = vmatprep.subr.bf16.mxu0 %v2339_v32  ;;  %931 = vmatprep.subr.bf16.mxu1 %v2343_v33 }
 0x282   :  { %891 = vmatpush1.bf16.msra.mxu0 %v2347_v34  ;;  %932 = vmatpush1.bf16.msra.mxu1 %v2349_v35 }
 0x283   :  { %892 = vmatprep.subr.bf16.mxu0 %v2353_v36  ;;  %933 = vmatprep.subr.bf16.mxu1 %v2360_v38 }
 0x286   :  { %893 = vmatpush1.bf16.msra.mxu0 %v2364_v39  ;;  %934 = vmatpush1.bf16.msra.mxu1 %v2366_v40 }
 0x287   :  { %894 = vmatprep.subr.bf16.mxu0 %v2368_v41  ;;  %935 = vmatprep.subr.bf16.mxu1 %v2370_v42 }
 0x28a   :  { %895 = vmatpush1.bf16.msra.mxu0 %v2376_v43  ;;  %936 = vmatpush1.bf16.msra.mxu1 %v2378_v44 }
 0x28b   :  { %995 = vmatprep.subr.bf16.mxu0 %v2269_v10  ;;  %1036 = vmatprep.subr.bf16.mxu1 %v2271_v11 }
 0x340   :  { %v799_v2 = vpop.f32.mrb[24].mxu0  ;;  %v840_v37 = vpop.f32.mrb[24].mxu1 }
 0x341   :  { %v847_v45 = vadd.f32 %v799_v2, %v2436_v53  ;;  %v849_v46 = vadd.f32 %v840_v37, %v2438_v54  ;;  %v801_v47 = vpop.f32.mrb[25].mxu0  ;;  %v842_v48 = vpop.f32.mrb[25].mxu1 }
 0x342   :  { %v848_v62 = vadd.f32 %v801_v47, %v2440_v55  ;;  %v850_v1 = vadd.f32 %v842_v48, %v2442_v56  ;;  %v803_v60 = vpop.f32.mrb[26].mxu0  ;;  %v844_v63 = vpop.f32.mrb[26].mxu1  ;;  %v2876_v48 = vld [vmem:[#allocation13_spill] sm:$0xff] }
 0x343   :  { %v851_v49 = vsub.f32 0.0, %v847_v45  ;;  %v804_v61 = vpop.f32.mrb[27].mxu0  ;;  %v845_v50 = vpop.f32.mrb[27].mxu1 }
 0x344   :  { %v856_v59 = vsub.f32 0.0, %v848_v62  ;;  %v862_v3 = vsub.f32 0.0, %v850_v1  ;;  %v2877_v1 = vld [vmem:[#allocation14_spill] sm:$0xff]  ;;  %v2878_v61 = vld [vmem:[#allocation15_spill] sm:$0xff] }
 0x345   :  { %v852_v51 = vmul.f32 1.442695, %v851_v49 }
 0x346   :  { %v857_v52 = vmul.f32 1.442695, %v856_v59  ;;  %v863_v53 = vmul.f32 1.442695, %v862_v3  ;;  %v2879_v59 = vld [vmem:[#allocation16_spill] sm:$0xff] }
 0x347   :  { %1948 = vpow2.f32 %v852_v51 }
 0x348   :  { %1950 = vpow2.f32 %v857_v52 }
 0x349   :  { %1952 = vpow2.f32 %v863_v53 }
 0x34a   :  { %1954 = vtanh.f32 %v849_v46 }
 0x351   :  { %v1949_v58 = vpop.eup %1948 }
 0x352   :  { %v1951_v54 = vpop.eup %1950  ;;  %v854_v0 = vadd.f32 1.0, %v1949_v58 }
 0x353   :  { %v859_v55 = vadd.f32 1.0, %v1951_v54  ;;  %v1953_v56 = vpop.eup %1952 }
 0x354   :  { %1956 = vrcp.f32 %v854_v0  ;;  %v1955_v4 = vpop.eup %1954  ;;  %v865_v19 = vadd.f32 1.0, %v1953_v56 }
 0x355   :  { %1958 = vrcp.f32 %v859_v55 }
 0x356   :  { %1960 = vrcp.f32 %v865_v19 }
 0x35e   :  { %v1957_v5 = vpop.eup %1956 }
 0x35f   :  { %v1959_v6 = vpop.eup %1958  ;;  %v868_v9 = vmul.f32 %v1957_v5, %v1955_v4 }
 0x360   :  { %v867_v29 = vmul.f32 %v1959_v6, %v2526_v8  ;;  %v1961_v2 = vpop.eup %1960 }
 0x362   :  { %v2568_v7 = vadd.f32 %v868_v9, %v867_v29 }
 0x364   :  { %1962 = vtanh.f32 %v2568_v7 }
 0x36e   :  { %v1963_v37 = vpop.eup %1962 }
 0x36f   :  { %v871_v45 = vmul.f32 %v1963_v37, %v1961_v2 }
 0x371   :  { %v879_v46 = vpack.c.bf16 %v871_v45, %v871_v45 }
 0x373   :  { %913 = vmatmul.mubr.bf16.vlgmr.msra.gmra.mrb[28].mxu0 %v879_v46  ;;  %954 = vmatmul.mubr.bf16.vlgmr.msra.gmra.mrb[28].mxu1 %v879_v46 }
 0x374   :  { %996 = vmatpush1.bf16.msra.mxu0 %v2273_v12  ;;  %1037 = vmatpush1.bf16.msra.mxu1 %v2275_v13 }
 0x375   :  { %997 = vmatprep.subr.bf16.mxu0 %v2278_v14  ;;  %1038 = vmatprep.subr.bf16.mxu1 %v2281_v15 }
 0x376   :  { %1027 = vmatprep.mubr.bf16.mxu0 %v2875_v57  ;;  %1068 = vmatprep.mubr.bf16.mxu1 %v2875_v57 }
 0x378   :  { %998 = vmatpush1.bf16.msra.mxu0 %v2285_v16  ;;  %1039 = vmatpush1.bf16.msra.mxu1 %v2289_v17 }
 0x379   :  { %999 = vmatprep.subr.bf16.mxu0 %v2293_v18  ;;  %1040 = vmatprep.subr.bf16.mxu1 %v2300_v20 }
 0x37c   :  { %1000 = vmatpush1.bf16.msra.mxu0 %v2302_v21  ;;  %1041 = vmatpush1.bf16.msra.mxu1 %v2306_v22 }
 0x37d   :  { %1001 = vmatprep.subr.bf16.mxu0 %v2310_v23  ;;  %1042 = vmatprep.subr.bf16.mxu1 %v2312_v24 }
 0x380   :  { %1002 = vmatpush1.bf16.msra.mxu0 %v2316_v25  ;;  %1043 = vmatpush1.bf16.msra.mxu1 %v2320_v26 }
 0x381   :  { %1003 = vmatprep.subr.bf16.mxu0 %v2324_v27  ;;  %1044 = vmatprep.subr.bf16.mxu1 %v2326_v28 }
 0x384   :  { %1004 = vmatpush1.bf16.msra.mxu0 %v2333_v30  ;;  %1045 = vmatpush1.bf16.msra.mxu1 %v2335_v31 }
 0x385   :  { %1005 = vmatprep.subr.bf16.mxu0 %v2339_v32  ;;  %1046 = vmatprep.subr.bf16.mxu1 %v2343_v33 }
 0x388   :  { %1006 = vmatpush1.bf16.msra.mxu0 %v2347_v34  ;;  %1047 = vmatpush1.bf16.msra.mxu1 %v2349_v35 }
 0x389   :  { %1007 = vmatprep.subr.bf16.mxu0 %v2353_v36  ;;  %1048 = vmatprep.subr.bf16.mxu1 %v2360_v38 }
 0x38c   :  { %1008 = vmatpush1.bf16.msra.mxu0 %v2364_v39  ;;  %1049 = vmatpush1.bf16.msra.mxu1 %v2366_v40 }
 0x38d   :  { %1009 = vmatprep.subr.bf16.mxu0 %v2368_v41  ;;  %1050 = vmatprep.subr.bf16.mxu1 %v2370_v42 }
 0x390   :  { %1010 = vmatpush1.bf16.msra.mxu0 %v2376_v43  ;;  %1051 = vmatpush1.bf16.msra.mxu1 %v2378_v44 }
 0x391   :  { %1110 = vmatprep.subr.bf16.mxu0 %v2269_v10  ;;  %1151 = vmatprep.subr.bf16.mxu1 %v2271_v11 }
 0x446   :  { %v914_v8 = vpop.f32.mrb[28].mxu0  ;;  %v955_v47 = vpop.f32.mrb[28].mxu1 }
 0x447   :  { %v962_v62 = vadd.f32 %v914_v8, %v2876_v48  ;;  %v964_v60 = vadd.f32 %v955_v47, %v2877_v1  ;;  %v916_v63 = vpop.f32.mrb[29].mxu0  ;;  %v957_v49 = vpop.f32.mrb[29].mxu1 }
 0x448   :  { %v963_v50 = vadd.f32 %v916_v63, %v2878_v61  ;;  %v965_v51 = vadd.f32 %v957_v49, %v2879_v59  ;;  %v918_v52 = vpop.f32.mrb[30].mxu0  ;;  %v959_v3 = vpop.f32.mrb[30].mxu1 }
 0x449   :  { %v966_v53 = vsub.f32 0.0, %v962_v62  ;;  %v919_v58 = vpop.f32.mrb[31].mxu0  ;;  %v960_v54 = vpop.f32.mrb[31].mxu1 }
 0x44a   :  { %v971_v10 = vsub.f32 0.0, %v963_v50  ;;  %v977_v55 = vsub.f32 0.0, %v965_v51 }
 0x44b   :  { %v967_v0 = vmul.f32 1.442695, %v966_v53 }
 0x44c   :  { %v972_v11 = vmul.f32 1.442695, %v971_v10  ;;  %v978_v56 = vmul.f32 1.442695, %v977_v55 }
 0x44d   :  { %1964 = vpow2.f32 %v967_v0 }
 0x44e   :  { %1966 = vpow2.f32 %v972_v11 }
 0x44f   :  { %1968 = vpow2.f32 %v978_v56 }
 0x450   :  { %1970 = vtanh.f32 %v964_v60 }
 0x457   :  { %v1965_v4 = vpop.eup %1964 }
 0x458   :  { %v1967_v5 = vpop.eup %1966  ;;  %v969_v6 = vadd.f32 1.0, %v1965_v4  ;;  %v2659_v4 = vld [vmem:[#allocation6] ss:$16 sps:$4 sm:$0xff]  }
 0x459   :  { %v974_v9 = vadd.f32 1.0, %v1967_v5  ;;  %v1969_v19 = vpop.eup %1968  ;;  %v2662_v5 = vld [vmem:[#allocation6 + $0x8] ss:$16 sps:$4 sm:$0xff]  }
 0x45a   :  { %1972 = vrcp.f32 %v969_v6  ;;  %v1971_v29 = vpop.eup %1970  ;;  %v980_v46 = vadd.f32 1.0, %v1969_v19  ;;  %v2665_v6 = vld [vmem:[#allocation6 + $0x24] ss:$16 sps:$4 sm:$0xff]   ;;  %v2673_v19 = vld [vmem:[#allocation6 + $0x20] ss:$16 sps:$4 sm:$0xff]  }
 0x45b   :  { %1974 = vrcp.f32 %v974_v9  ;;  %v2668_v9 = vld [vmem:[#allocation6 + $0x2c] ss:$16 sps:$4 sm:$0xff]  }
 0x45c   :  { %1976 = vrcp.f32 %v980_v46  ;;  %v2688_v46 = vld [vmem:[#allocation6 + $0x48] ss:$16 sps:$4 sm:$0xff]  }
 0x464   :  { %v1973_v2 = vpop.eup %1972 }
 0x465   :  { %v1975_v37 = vpop.eup %1974  ;;  %v983_v45 = vmul.f32 %v1973_v2, %v1971_v29  ;;  %v2676_v29 = vld [vmem:[#allocation6 + $0x28] ss:$16 sps:$4 sm:$0xff]   ;;  %v2679_v2 = vld [vmem:[#allocation6 + $0x44] ss:$16 sps:$4 sm:$0xff]  }
 0x466   :  { %v982_v8 = vmul.f32 %v1975_v37, %v2568_v7  ;;  %v1977_v48 = vpop.eup %1976  ;;  %v2682_v37 = vld [vmem:[#allocation6 + $0x4c] ss:$16 sps:$4 sm:$0xff]  }
 0x468   :  { %v2610_v47 = vadd.f32 %v983_v45, %v982_v8  ;;  %v2685_v45 = vld [vmem:[#allocation6 + $0x40] ss:$16 sps:$4 sm:$0xff]   ;;  %v2691_v8 = vld [vmem:[#allocation6 + $0x64] ss:$16 sps:$4 sm:$0xff]  }
 0x46a   :  { %1978 = vtanh.f32 %v2610_v47 }
 0x474   :  { %v1979_v62 = vpop.eup %1978 }
 0x475   :  { %v986_v1 = vmul.f32 %v1979_v62, %v1977_v48  ;;  %v2697_v48 = vld [vmem:[#allocation6 + $0x60] ss:$16 sps:$4 sm:$0xff]   ;;  %v2700_v62 = vld [vmem:[#allocation6 + $0x68] ss:$16 sps:$4 sm:$0xff]  }
 0x477   :  { %v994_v60 = vpack.c.bf16 %v986_v1, %v986_v1  ;;  %v2703_v1 = vld [vmem:[#allocation6 + $0x84] ss:$16 sps:$4 sm:$0xff]  }
 0x479   :  { %1028 = vmatmul.mubr.bf16.vlgmr.msra.gmra.mrb[32].mxu0 %v994_v60  ;;  %1069 = vmatmul.mubr.bf16.vlgmr.msra.gmra.mrb[32].mxu1 %v994_v60  ;;  %v2706_v60 = vld [vmem:[#allocation6 + $0x8c] ss:$16 sps:$4 sm:$0xff]  }
 0x47a   :  { %1111 = vmatpush1.bf16.msra.mxu0 %v2273_v12  ;;  %1152 = vmatpush1.bf16.msra.mxu1 %v2275_v13  ;;  %v2645_v12 = vld [vmem:[#allocation6 + $0x4] ss:$16 sps:$4 sm:$0xff]   ;;  %v2648_v13 = vld [vmem:[#allocation6 + $0xc] ss:$16 sps:$4 sm:$0xff]  }
 0x47b   :  { %1112 = vmatprep.subr.bf16.mxu0 %v2278_v14  ;;  %1153 = vmatprep.subr.bf16.mxu1 %v2281_v15 }
 0x47c   :  { %1142 = vmatprep.mubr.bf16.mxu0 %v2875_v57  ;;  %1183 = vmatprep.mubr.bf16.mxu1 %v2875_v57 }
 0x47e   :  { %1113 = vmatpush1.bf16.msra.mxu0 %v2285_v16  ;;  %1154 = vmatpush1.bf16.msra.mxu1 %v2289_v17  ;;  %v2880_v16 = vld [vmem:[#allocation17_spill] sm:$0xff] }
 0x47f   :  { %1114 = vmatprep.subr.bf16.mxu0 %v2293_v18  ;;  %1155 = vmatprep.subr.bf16.mxu1 %v2300_v20  ;;  %v2881_v18 = vld [vmem:[#allocation18_spill] sm:$0xff] }
 0x482   :  { %1115 = vmatpush1.bf16.msra.mxu0 %v2302_v21  ;;  %1156 = vmatpush1.bf16.msra.mxu1 %v2306_v22 }
 0x483   :  { %1116 = vmatprep.subr.bf16.mxu0 %v2310_v23  ;;  %1157 = vmatprep.subr.bf16.mxu1 %v2312_v24  ;;  %v2882_v23 = vld [vmem:[#allocation19_spill] sm:$0xff] }
 0x486   :  { %1117 = vmatpush1.bf16.msra.mxu0 %v2316_v25  ;;  %1158 = vmatpush1.bf16.msra.mxu1 %v2320_v26  ;;  %v2883_v25 = vld [vmem:[#allocation20_spill] sm:$0xff] }
 0x487   :  { %1118 = vmatprep.subr.bf16.mxu0 %v2324_v27  ;;  %1159 = vmatprep.subr.bf16.mxu1 %v2326_v28 }
 0x48a   :  { %1119 = vmatpush1.bf16.msra.mxu0 %v2333_v30  ;;  %1160 = vmatpush1.bf16.msra.mxu1 %v2335_v31 }
 0x48b   :  { %1120 = vmatprep.subr.bf16.mxu0 %v2339_v32  ;;  %1161 = vmatprep.subr.bf16.mxu1 %v2343_v33 }
 0x48e   :  { %1121 = vmatpush1.bf16.msra.mxu0 %v2347_v34  ;;  %1162 = vmatpush1.bf16.msra.mxu1 %v2349_v35 }
 0x48f   :  { %1122 = vmatprep.subr.bf16.mxu0 %v2353_v36  ;;  %1163 = vmatprep.subr.bf16.mxu1 %v2360_v38 }
 0x492   :  { %1123 = vmatpush1.bf16.msra.mxu0 %v2364_v39  ;;  %1164 = vmatpush1.bf16.msra.mxu1 %v2366_v40 }
 0x493   :  { %1124 = vmatprep.subr.bf16.mxu0 %v2368_v41  ;;  %1165 = vmatprep.subr.bf16.mxu1 %v2370_v42 }
 0x496   :  { %1125 = vmatpush1.bf16.msra.mxu0 %v2376_v43  ;;  %1166 = vmatpush1.bf16.msra.mxu1 %v2378_v44 }
 0x497   :  { %1225 = vmatprep.subr.bf16.mxu0 %v2645_v12  ;;  %1266 = vmatprep.subr.bf16.mxu1 %v2648_v13 }
 0x54c   :  { %v1029_v14 = vpop.f32.mrb[32].mxu0  ;;  %v1070_v15 = vpop.f32.mrb[32].mxu1 }
 0x54d   :  { %v1077_v17 = vadd.f32 %v1029_v14, %v2880_v16  ;;  %v1079_v20 = vadd.f32 %v1070_v15, %v2881_v18  ;;  %v1031_v21 = vpop.f32.mrb[33].mxu0  ;;  %v1072_v22 = vpop.f32.mrb[33].mxu1  ;;  %v2709_v14 = vld [vmem:[#allocation6 + $0x80] ss:$16 sps:$4 sm:$0xff]   ;;  %v2712_v15 = vld [vmem:[#allocation6 + $0x88] ss:$16 sps:$4 sm:$0xff]  }
 0x54e   :  { %v1078_v24 = vadd.f32 %v1031_v21, %v2882_v23  ;;  %v1080_v26 = vadd.f32 %v1072_v22, %v2883_v25  ;;  %v1033_v27 = vpop.f32.mrb[34].mxu0  ;;  %v1074_v28 = vpop.f32.mrb[34].mxu1  ;;  %v2715_v16 = vld [vmem:[#allocation6 + $0xa4] ss:$16 sps:$4 sm:$0xff]   ;;  %v2721_v18 = vld [vmem:[#allocation6 + $0xa0] ss:$16 sps:$4 sm:$0xff]  }
 0x54f   :  { %v1081_v30 = vsub.f32 0.0, %v1077_v17  ;;  %v1034_v31 = vpop.f32.mrb[35].mxu0  ;;  %v1075_v32 = vpop.f32.mrb[35].mxu1  ;;  %v2718_v17 = vld [vmem:[#allocation6 + $0xac] ss:$16 sps:$4 sm:$0xff]   ;;  %v2885_v25 = vld [vmem:[#allocation22_spill] sm:$0xff] }
 0x550   :  { %v1086_v33 = vsub.f32 0.0, %v1078_v24  ;;  %v1092_v36 = vsub.f32 0.0, %v1080_v26  ;;  %v2727_v21 = vld [vmem:[#allocation6 + $0xc4] ss:$16 sps:$4 sm:$0xff]   ;;  %v2884_v24 = vld [vmem:[#allocation21_spill] sm:$0xff]  ;;  %v2886_v27 = vld [vmem:[#allocation23_spill] sm:$0xff] }
 0x551   :  { %v1082_v34 = vmul.f32 1.442695, %v1081_v30  ;;  %v2887_v28 = vld [vmem:[#allocation24_spill] sm:$0xff] }
 0x552   :  { %v1087_v35 = vmul.f32 1.442695, %v1086_v33  ;;  %v1093_v7 = vmul.f32 1.442695, %v1092_v36 }
 0x553   :  { %1980 = vpow2.f32 %v1082_v34 }
 0x554   :  { %1982 = vpow2.f32 %v1087_v35 }
 0x555   :  { %1984 = vpow2.f32 %v1093_v7 }
 0x556   :  { %1986 = vtanh.f32 %v1079_v20  ;;  %v2724_v20 = vld [vmem:[#allocation6 + $0xa8] ss:$16 sps:$4 sm:$0xff]  }
 0x55d   :  { %v1981_v63 = vpop.eup %1980 }
 0x55e   :  { %v1983_v49 = vpop.eup %1982  ;;  %v1084_v61 = vadd.f32 1.0, %v1981_v63 }
 0x55f   :  { %v1089_v50 = vadd.f32 1.0, %v1983_v49  ;;  %v1985_v59 = vpop.eup %1984 }
 0x560   :  { %1988 = vrcp.f32 %v1084_v61  ;;  %v1987_v51 = vpop.eup %1986  ;;  %v1095_v58 = vadd.f32 1.0, %v1985_v59 }
 0x561   :  { %1990 = vrcp.f32 %v1089_v50 }
 0x562   :  { %1992 = vrcp.f32 %v1095_v58 }
 0x56a   :  { %v1989_v52 = vpop.eup %1988 }
 0x56b   :  { %v1991_v3 = vpop.eup %1990  ;;  %v1098_v53 = vmul.f32 %v1989_v52, %v1987_v51 }
 0x56c   :  { %v1097_v54 = vmul.f32 %v1991_v3, %v2610_v47  ;;  %v1993_v0 = vpop.eup %1992  ;;  %v2694_v47 = vld [vmem:[#allocation6 + $0x6c] ss:$16 sps:$4 sm:$0xff]  }
 0x56e   :  { %v2656_v10 = vadd.f32 %v1098_v53, %v1097_v54 }
 0x570   :  { %1994 = vtanh.f32 %v2656_v10 }
 0x57a   :  { %v1995_v11 = vpop.eup %1994 }
 0x57b   :  { %v1101_v55 = vmul.f32 %v1995_v11, %v1993_v0 }
 0x57d   :  { %v1109_v56 = vpack.c.bf16 %v1101_v55, %v1101_v55 }
 0x57f   :  { %1143 = vmatmul.mubr.bf16.vlgmr.msra.gmra.mrb[36].mxu0 %v1109_v56  ;;  %1184 = vmatmul.mubr.bf16.vlgmr.msra.gmra.mrb[36].mxu1 %v1109_v56  ;;  %v2071_v56 = vld [vmem:[#allocation6 + $0xc8] ss:$16 sps:$4 sm:$0xff]  }
 0x580   :  { %1226 = vmatpush1.bf16.msra.mxu0 %v2659_v4  ;;  %1267 = vmatpush1.bf16.msra.mxu1 %v2662_v5 }
 0x581   :  { %1227 = vmatprep.subr.bf16.mxu0 %v2665_v6  ;;  %1268 = vmatprep.subr.bf16.mxu1 %v2668_v9 }
 0x582   :  { %1257 = vmatprep.mubr.bf16.mxu0 %v2875_v57  ;;  %1298 = vmatprep.mubr.bf16.mxu1 %v2875_v57 }
 0x584   :  { %1228 = vmatpush1.bf16.msra.mxu0 %v2673_v19  ;;  %1269 = vmatpush1.bf16.msra.mxu1 %v2676_v29 }
 0x585   :  { %1229 = vmatprep.subr.bf16.mxu0 %v2679_v2  ;;  %1270 = vmatprep.subr.bf16.mxu1 %v2682_v37 }
 0x588   :  { %1230 = vmatpush1.bf16.msra.mxu0 %v2685_v45  ;;  %1271 = vmatpush1.bf16.msra.mxu1 %v2688_v46 }
 0x589   :  { %1231 = vmatprep.subr.bf16.mxu0 %v2691_v8  ;;  %1272 = vmatprep.subr.bf16.mxu1 %v2694_v47 }
 0x58c   :  { %1232 = vmatpush1.bf16.msra.mxu0 %v2697_v48  ;;  %1273 = vmatpush1.bf16.msra.mxu1 %v2700_v62 }
 0x58d   :  { %1233 = vmatprep.subr.bf16.mxu0 %v2703_v1  ;;  %1274 = vmatprep.subr.bf16.mxu1 %v2706_v60 }
 0x590   :  { %1234 = vmatpush1.bf16.msra.mxu0 %v2709_v14  ;;  %1275 = vmatpush1.bf16.msra.mxu1 %v2712_v15 }
 0x591   :  { %1235 = vmatprep.subr.bf16.mxu0 %v2715_v16  ;;  %1276 = vmatprep.subr.bf16.mxu1 %v2718_v17 }
 0x594   :  { %1236 = vmatpush1.bf16.msra.mxu0 %v2721_v18  ;;  %1277 = vmatpush1.bf16.msra.mxu1 %v2724_v20 }
 0x595   :  { %1237 = vmatprep.subr.bf16.mxu0 %v2727_v21  ;;  %1278 = vmatprep.subr.bf16.mxu1 %v2360_v38 }
 0x598   :  { %1238 = vmatpush1.bf16.msra.mxu0 %v2364_v39  ;;  %1279 = vmatpush1.bf16.msra.mxu1 %v2366_v40 }
 0x599   :  { %1239 = vmatprep.subr.bf16.mxu0 %v2368_v41  ;;  %1280 = vmatprep.subr.bf16.mxu1 %v2370_v42 }
 0x59c   :  { %1240 = vmatpush1.bf16.msra.mxu0 %v2376_v43  ;;  %1281 = vmatpush1.bf16.msra.mxu1 %v2378_v44 }
 0x59d   :  { %1340 = vmatprep.subr.bf16.mxu0 %v2645_v12  ;;  %1381 = vmatprep.subr.bf16.mxu1 %v2648_v13 }
 0x652   :  { %v1144_v22 = vpop.f32.mrb[36].mxu0  ;;  %v1185_v23 = vpop.f32.mrb[36].mxu1 }
 0x653   :  { %v1192_v38 = vadd.f32 %v1144_v22, %v2884_v24  ;;  %v1194_v39 = vadd.f32 %v1185_v23, %v2885_v25  ;;  %v1146_v26 = vpop.f32.mrb[37].mxu0  ;;  %v1187_v40 = vpop.f32.mrb[37].mxu1 }
 0x654   :  { %v1193_v41 = vadd.f32 %v1146_v26, %v2886_v27  ;;  %v1195_v42 = vadd.f32 %v1187_v40, %v2887_v28  ;;  %v1148_v30 = vpop.f32.mrb[38].mxu0  ;;  %v1189_v43 = vpop.f32.mrb[38].mxu1 }
 0x655   :  { %v1196_v31 = vsub.f32 0.0, %v1192_v38  ;;  %v1149_v44 = vpop.f32.mrb[39].mxu0  ;;  %v1190_v32 = vpop.f32.mrb[39].mxu1 }
 0x656   :  { %v1201_v12 = vsub.f32 0.0, %v1193_v41  ;;  %v1207_v34 = vsub.f32 0.0, %v1195_v42 }
 0x657   :  { %v1197_v33 = vmul.f32 1.442695, %v1196_v31 }
 0x658   :  { %v1202_v13 = vmul.f32 1.442695, %v1201_v12  ;;  %v1208_v35 = vmul.f32 1.442695, %v1207_v34  ;;  %v2178_v34 = vmov 0.0  }
 0x659   :  { %1996 = vpow2.f32 %v1197_v33 }
 0x65a   :  { %1998 = vpow2.f32 %v1202_v13  ;;  %v1900_v13 = vld [vmem:[#allocation8] sm:$0xff]  }
 0x65b   :  { %2000 = vpow2.f32 %v1208_v35  ;;  %v1901_v35 = vld [vmem:[#allocation8 + $0x8] sm:$0xff]  }
 0x65c   :  { %2002 = vtanh.f32 %v1194_v39 }
 0x663   :  { %v1997_v36 = vpop.eup %1996 }
 0x664   :  { %v1999_v7 = vpop.eup %1998  ;;  %v1199_v63 = vadd.f32 1.0, %v1997_v36  ;;  %v1902_v36 = vld [vmem:[#allocation8 + $0x10] sm:$0xff]  }
 0x665   :  { %v1204_v49 = vadd.f32 1.0, %v1999_v7  ;;  %v2001_v61 = vpop.eup %2000  ;;  %v1903_v7 = vld [vmem:[#allocation8 + $0x18] sm:$0xff]  }
 0x666   :  { %2004 = vrcp.f32 %v1199_v63  ;;  %v2003_v50 = vpop.eup %2002  ;;  %v1210_v3 = vadd.f32 1.0, %v2001_v61  ;;  %v1904_v63 = vld [vmem:[#allocation8 + $0x20] sm:$0xff]   ;;  %v1906_v61 = vld [vmem:[#allocation8 + $0x30] sm:$0xff]  }
 0x667   :  { %2006 = vrcp.f32 %v1204_v49  ;;  %v1905_v49 = vld [vmem:[#allocation8 + $0x28] sm:$0xff]  }
 0x668   :  { %2008 = vrcp.f32 %v1210_v3  ;;  %v1911_v3 = vld [vmem:[%s2850_s5 + $0x18] sm:$0xff]  }
 0x670   :  { %v2005_v59 = vpop.eup %2004 }
 0x671   :  { %v2007_v51 = vpop.eup %2006  ;;  %v1213_v52 = vmul.f32 %v2005_v59, %v2003_v50  ;;  %v1907_v50 = vld [vmem:[#allocation8 + $0x38] sm:$0xff]   ;;  %v1908_v59 = vld [vmem:[%s2850_s5] sm:$0xff]  }
 0x672   :  { %v1212_v53 = vmul.f32 %v2007_v51, %v2656_v10  ;;  %v2009_v54 = vpop.eup %2008  ;;  %v2070_v10 = vld [vmem:[#allocation6 + $0xc0] ss:$16 sps:$4 sm:$0xff]   ;;  %v1909_v51 = vld [vmem:[%s2850_s5 + $0x8] sm:$0xff]  }
 0x674   :  { %v2744_v58 = vadd.f32 %v1213_v52, %v1212_v53  ;;  %v1910_v52 = vld [vmem:[%s2850_s5 + $0x10] sm:$0xff]   ;;  %v1912_v53 = vld [vmem:[%s2850_s5 + $0x20] sm:$0xff]  }
 0x676   :  { %2010 = vtanh.f32 %v2744_v58 }
 0x680   :  { %v2011_v0 = vpop.eup %2010 }
 0x681   :  { %v1216_v11 = vmul.f32 %v2011_v0, %v2009_v54 }
 0x683   :  { %v1224_v55 = vpack.c.bf16 %v1216_v11, %v1216_v11  ;;  %v2892_v11 = vld [vmem:[#allocation29_spill] sm:$0xff] }
 0x685   :  { %1258 = vmatmul.mubr.bf16.vlgmr.msra.gmra.mrb[40].mxu0 %v1224_v55  ;;  %1299 = vmatmul.mubr.bf16.vlgmr.msra.gmra.mrb[40].mxu1 %v1224_v55 }
 0x686   :  { %1341 = vmatpush1.bf16.msra.mxu0 %v2659_v4  ;;  %1382 = vmatpush1.bf16.msra.mxu1 %v2662_v5  ;;  %v2072_v4 = vld [vmem:[#allocation6 + $0xe4] ss:$16 sps:$4 sm:$0xff]   ;;  %v2073_v5 = vld [vmem:[#allocation6 + $0xec] ss:$16 sps:$4 sm:$0xff]  }
 0x687   :  { %1342 = vmatprep.subr.bf16.mxu0 %v2665_v6  ;;  %1383 = vmatprep.subr.bf16.mxu1 %v2668_v9  ;;  %v2074_v6 = vld [vmem:[#allocation6 + $0xe0] ss:$16 sps:$4 sm:$0xff]   ;;  %v2075_v9 = vld [vmem:[#allocation6 + $0xe8] ss:$16 sps:$4 sm:$0xff]  }
 0x688   :  { %1372 = vmatprep.mubr.bf16.mxu0 %v2875_v57  ;;  %1413 = vmatprep.mubr.bf16.mxu1 %v2875_v57  ;;  %v2069_v57 = vld [vmem:[#allocation6 + $0xcc] ss:$16 sps:$4 sm:$0xff]  }
 0x68a   :  { %1343 = vmatpush1.bf16.msra.mxu0 %v2673_v19  ;;  %1384 = vmatpush1.bf16.msra.mxu1 %v2676_v29 }
 0x68b   :  { %1344 = vmatprep.subr.bf16.mxu0 %v2679_v2  ;;  %1385 = vmatprep.subr.bf16.mxu1 %v2682_v37  ;;  %v2888_v2 = vld [vmem:[#allocation25_spill] sm:$0xff] }
 0x68e   :  { %1345 = vmatpush1.bf16.msra.mxu0 %v2685_v45  ;;  %1386 = vmatpush1.bf16.msra.mxu1 %v2688_v46  ;;  %v2889_v45 = vld [vmem:[#allocation26_spill] sm:$0xff] }
 0x68f   :  { %1346 = vmatprep.subr.bf16.mxu0 %v2691_v8  ;;  %1387 = vmatprep.subr.bf16.mxu1 %v2694_v47 }
 0x692   :  { %1347 = vmatpush1.bf16.msra.mxu0 %v2697_v48  ;;  %1388 = vmatpush1.bf16.msra.mxu1 %v2700_v62  ;;  %v2890_v48 = vld [vmem:[#allocation27_spill] sm:$0xff] }
 0x693   :  { %1348 = vmatprep.subr.bf16.mxu0 %v2703_v1  ;;  %1389 = vmatprep.subr.bf16.mxu1 %v2706_v60  ;;  %v2891_v1 = vld [vmem:[#allocation28_spill] sm:$0xff] }
 0x696   :  { %1349 = vmatpush1.bf16.msra.mxu0 %v2709_v14  ;;  %1390 = vmatpush1.bf16.msra.mxu1 %v2712_v15 }
 0x697   :  { %1350 = vmatprep.subr.bf16.mxu0 %v2715_v16  ;;  %1391 = vmatprep.subr.bf16.mxu1 %v2718_v17 }
 0x69a   :  { %1351 = vmatpush1.bf16.msra.mxu0 %v2721_v18  ;;  %1392 = vmatpush1.bf16.msra.mxu1 %v2724_v20 }
 0x69b   :  { %1352 = vmatprep.subr.bf16.mxu0 %v2727_v21  ;;  %1393 = vmatprep.subr.bf16.mxu1 %v2069_v57  ;;  %v2893_v57 = vld [vmem:[#allocation30_spill] sm:$0xff] }
 0x69e   :  { %1353 = vmatpush1.bf16.msra.mxu0 %v2070_v10  ;;  %1394 = vmatpush1.bf16.msra.mxu1 %v2071_v56 }
 0x69f   :  { %1354 = vmatprep.subr.bf16.mxu0 %v2072_v4  ;;  %1395 = vmatprep.subr.bf16.mxu1 %v2073_v5  ;;  %v2894_v5 = vld [vmem:[#allocation31_spill] sm:$0xff] }
 0x6a2   :  { %1355 = vmatpush1.bf16.msra.mxu0 %v2074_v6  ;;  %1396 = vmatpush1.bf16.msra.mxu1 %v2075_v9  ;;  %v2895_v9 = vld [vmem:[#allocation32_spill] sm:$0xff] }
 0x6a3   :  { %1785 = vmatprep.subr.bf16.mxu0 %v2178_v34  ;;  %1805 = vmatprep.subr.bf16.mxu1 %v2178_v34 }
 0x758   :  { %v1259_v19 = vpop.f32.mrb[40].mxu0  ;;  %v1300_v29 = vpop.f32.mrb[40].mxu1 }
 0x759   :  { %v1307_v37 = vadd.f32 %v1259_v19, %v2888_v2  ;;  %v1309_v46 = vadd.f32 %v1300_v29, %v2889_v45  ;;  %v1261_v8 = vpop.f32.mrb[41].mxu0  ;;  %v1302_v47 = vpop.f32.mrb[41].mxu1 }
 0x75a   :  { %v1308_v62 = vadd.f32 %v1261_v8, %v2890_v48  ;;  %v1310_v60 = vadd.f32 %v1302_v47, %v2891_v1  ;;  %v1263_v14 = vpop.f32.mrb[42].mxu0  ;;  %v1304_v15 = vpop.f32.mrb[42].mxu1 }
 0x75b   :  { %v1311_v16 = vsub.f32 0.0, %v1307_v37  ;;  %v1264_v17 = vpop.f32.mrb[43].mxu0  ;;  %v1305_v18 = vpop.f32.mrb[43].mxu1 }
 0x75c   :  { %v1316_v20 = vsub.f32 0.0, %v1308_v62  ;;  %v1322_v23 = vsub.f32 0.0, %v1310_v60 }
 0x75d   :  { %v1312_v21 = vmul.f32 1.442695, %v1311_v16 }
 0x75e   :  { %v1317_v22 = vmul.f32 1.442695, %v1316_v20  ;;  %v1323_v24 = vmul.f32 1.442695, %v1322_v23 }
 0x75f   :  { %2012 = vpow2.f32 %v1312_v21 }
 0x760   :  { %2014 = vpow2.f32 %v1317_v22 }
 0x761   :  { %2016 = vpow2.f32 %v1323_v24 }
 0x762   :  { %2018 = vtanh.f32 %v1309_v46 }
 0x769   :  { %v2013_v38 = vpop.eup %2012 }
 0x76a   :  { %v2015_v25 = vpop.eup %2014  ;;  %v1314_v39 = vadd.f32 1.0, %v2013_v38 }
 0x76b   :  { %v1319_v26 = vadd.f32 1.0, %v2015_v25  ;;  %v2017_v40 = vpop.eup %2016 }
 0x76c   :  { %2020 = vrcp.f32 %v1314_v39  ;;  %v2019_v27 = vpop.eup %2018  ;;  %v1325_v30 = vadd.f32 1.0, %v2017_v40 }
 0x76d   :  { %2022 = vrcp.f32 %v1319_v26 }
 0x76e   :  { %2024 = vrcp.f32 %v1325_v30 }
 0x776   :  { %v2021_v41 = vpop.eup %2020 }
 0x777   :  { %v2023_v28 = vpop.eup %2022  ;;  %v1328_v42 = vmul.f32 %v2021_v41, %v2019_v27  ;;  %v1914_v27 = vld [vmem:[%s2850_s5 + $0x30] sm:$0xff]   ;;  %v1915_v41 = vld [vmem:[%s2850_s5 + $0x38] sm:$0xff]  }
 0x778   :  { %v1327_v43 = vmul.f32 %v2023_v28, %v2744_v58  ;;  %v2025_v44 = vpop.eup %2024  ;;  %v1913_v58 = vld [vmem:[%s2850_s5 + $0x28] sm:$0xff]   ;;  %v1749_v28 = vld [vmem:[%s2849_s4] ss:$0 sm:$0xff]  ;;  %s1680_s5 = sshll.u32 %s2180_s16, 4  ;;  %s1681_s5 = int_to_ptr.vmem [resolvable:$true] %s1680_s5 }
 0x779   :  { %s2142_s4 = scalar_lea.vmem %s1681_s5, 128  ;;  %p2147_p11 = scmp.lt.s32.totalorder %s1681_s5, %s1681_s5 }
 0x77a   :  { %v2777_v31 = vadd.f32 %v1328_v42, %v1327_v43  ;;  %p2143_p10 = scmp.ne.s32.totalorder %s1681_s5, %s2142_s4  ;;  %p2148_p12 = scmp.lt.s32.totalorder %s2142_s4, %s2142_s4 }
 0x77c   :  { %2026 = vtanh.f32 %v2777_v31  ;;  %p2149_p13 = por %p2148_p12, %p2147_p11 }
 0x77e   :  { %p2150_p0 = pnand %p2149_p13, %p2143_p10 }
 0x786   :  { %v2027_v32 = vpop.eup %2026 }
 0x787   :  { %v1331_v12 = vmul.f32 %v2027_v32, %v2025_v44 }
 0x789   :  { %v1339_v33 = vpack.c.bf16 %v1331_v12, %v1331_v12 }
 0x78b   :  { %1373 = vmatmul.mubr.bf16.vlgmr.msra.gmra.mrb[44].mxu0 %v1339_v33  ;;  %1414 = vmatmul.mubr.bf16.vlgmr.msra.gmra.mrb[44].mxu1 %v1339_v33  ;;  %v1758_v33 = vld [vmem:[%s2851_s6] ss:$0 sm:$0xff] }
 0x78c   :  { %1786 = vmatpush3.bf16.msra.mxu0 %v1900_v13  ;;  %1801 = vmatprep.mubr.msk.bf16.mxu0 %vm2179_vm1, %v2178_v34 }
 0x78d   :  { %1787 = vmatprep.subr.bf16.mxu0 %v2178_v34  ;;  %1821 = vmatprep.mubr.msk.bf16.mxu1 %vm2179_vm1, %v2178_v34 }
 0x78e   :  { %1806 = vmatpush3.bf16.msra.mxu1 %v1908_v59 }
 0x78f   :  { %1807 = vmatprep.subr.bf16.mxu1 %v2178_v34 }
 0x790   :  { %1788 = vmatpush3.bf16.msra.mxu0 %v1901_v35 }
 0x791   :  { %1789 = vmatprep.subr.bf16.mxu0 %v2178_v34 }
 0x792   :  { %1808 = vmatpush3.bf16.msra.mxu1 %v1909_v51 }
 0x793   :  { %1809 = vmatprep.subr.bf16.mxu1 %v2178_v34 }
 0x794   :  { %1790 = vmatpush3.bf16.msra.mxu0 %v1902_v36 }
 0x795   :  { %1791 = vmatprep.subr.bf16.mxu0 %v2178_v34 }
 0x796   :  { %1810 = vmatpush3.bf16.msra.mxu1 %v1910_v52 }
 0x797   :  { %1811 = vmatprep.subr.bf16.mxu1 %v2178_v34 }
 0x798   :  { %1792 = vmatpush3.bf16.msra.mxu0 %v1903_v7 }
 0x799   :  { %1793 = vmatprep.subr.bf16.mxu0 %v2178_v34 }
 0x79a   :  { %1812 = vmatpush3.bf16.msra.mxu1 %v1911_v3 }
 0x79b   :  { %1813 = vmatprep.subr.bf16.mxu1 %v2178_v34 }
 0x79c   :  { %1794 = vmatpush3.bf16.msra.mxu0 %v1904_v63 }
 0x79d   :  { %1795 = vmatprep.subr.bf16.mxu0 %v2178_v34 }
 0x79e   :  { %1814 = vmatpush3.bf16.msra.mxu1 %v1912_v53 }
 0x79f   :  { %1815 = vmatprep.subr.bf16.mxu1 %v2178_v34 }
 0x7a0   :  { %1796 = vmatpush3.bf16.msra.mxu0 %v1905_v49 }
 0x7a1   :  { %1797 = vmatprep.subr.bf16.mxu0 %v2178_v34 }
 0x7a2   :  { %1816 = vmatpush3.bf16.msra.mxu1 %v1913_v58 }
 0x7a3   :  { %1817 = vmatprep.subr.bf16.mxu1 %v2178_v34 }
 0x7a4   :  { %1798 = vmatpush3.bf16.msra.mxu0 %v1906_v61 }
 0x7a5   :  { %1799 = vmatprep.subr.bf16.mxu0 %v2178_v34 }
 0x7a6   :  { %1818 = vmatpush3.bf16.msra.mxu1 %v1914_v27 }
 0x7a7   :  { %1819 = vmatprep.subr.bf16.mxu1 %v2178_v34 }
 0x7a8   :  { %1800 = vmatpush3.bf16.msra.mxu0 %v1907_v50 }
 0x7aa   :  { %1820 = vmatpush3.bf16.msra.mxu1 %v1915_v41 }
 0x85e   :  { %v1374_v54 = vpop.f32.mrb[44].mxu0  ;;  %v1415_v0 = vpop.f32.mrb[44].mxu1 }
 0x85f   :  { %v1422_v55 = vadd.f32 %v1374_v54, %v2892_v11  ;;  %v1424_v10 = vadd.f32 %v1415_v0, %v2893_v57  ;;  %v1376_v56 = vpop.f32.mrb[45].mxu0  ;;  %v1417_v4 = vpop.f32.mrb[45].mxu1 }
 0x860   :  { %v1423_v6 = vadd.f32 %v1376_v56, %v2894_v5  ;;  %v1425_v19 = vadd.f32 %v1417_v4, %v2895_v9  ;;  %v1378_v29 = vpop.f32.mrb[46].mxu0  ;;  %v1419_v2 = vpop.f32.mrb[46].mxu1 }
 0x861   :  { %v1426_v37 = vsub.f32 0.0, %v1422_v55  ;;  %v1379_v45 = vpop.f32.mrb[47].mxu0  ;;  %v1420_v46 = vpop.f32.mrb[47].mxu1 }
 0x862   :  { %v1431_v8 = vsub.f32 0.0, %v1423_v6  ;;  %v1437_v62 = vsub.f32 0.0, %v1425_v19 }
 0x863   :  { %v1427_v47 = vmul.f32 1.442695, %v1426_v37 }
 0x864   :  { %v1432_v48 = vmul.f32 1.442695, %v1431_v8  ;;  %v1438_v1 = vmul.f32 1.442695, %v1437_v62 }
 0x865   :  { %2028 = vpow2.f32 %v1427_v47 }
 0x866   :  { %2030 = vpow2.f32 %v1432_v48 }
 0x867   :  { %2032 = vpow2.f32 %v1438_v1 }
 0x868   :  { %2034 = vtanh.f32 %v1424_v10 }
 0x86f   :  { %v2029_v60 = vpop.eup %2028 }
 0x870   :  { %v2031_v14 = vpop.eup %2030  ;;  %v1429_v15 = vadd.f32 1.0, %v2029_v60 }
 0x871   :  { %v1434_v16 = vadd.f32 1.0, %v2031_v14  ;;  %v2033_v17 = vpop.eup %2032 }
 0x872   :  { %2036 = vrcp.f32 %v1429_v15  ;;  %v2035_v18 = vpop.eup %2034  ;;  %v1440_v23 = vadd.f32 1.0, %v2033_v17 }
 0x873   :  { %2038 = vrcp.f32 %v1434_v16 }
 0x874   :  { %2040 = vrcp.f32 %v1440_v23 }
 0x87c   :  { %v2037_v20 = vpop.eup %2036 }
 0x87d   :  { %v2039_v21 = vpop.eup %2038  ;;  %v1443_v22 = vmul.f32 %v2037_v20, %v2035_v18 }
 0x87e   :  { %v1442_v24 = vmul.f32 %v2039_v21, %v2777_v31  ;;  %v2041_v25 = vpop.eup %2040 }
 0x880   :  { %v1444_v38 = vadd.f32 %v1443_v22, %v1442_v24 }
 0x882   :  { %2042 = vtanh.f32 %v1444_v38 }
 0x88c   :  { %v2043_v39 = vpop.eup %2042 }
 0x88d   :  { %v1446_v26 = vmul.f32 %v2043_v39, %v2041_v25 }
 0x88f   :  { %v1447_v40 = vpack.c.bf16 %v1446_v26, %v1446_v26 }
 0x891   :  { %1802 = vmatmul.mubr.bf16.vlgmr.msra.gmra.mrb[48].mxu0 %v1447_v40 }
 0x964   :  { %v1553_v42 = vpop.f32.mrb[48].mxu0 }
 0x965   :  { %v1554_v30 = vadd.f32 %v1749_v28, %v1553_v42  ;;  %v1803_v43 = vpop.f32.mrb[49].mxu0 }
 0x966   :  { %v1556_v31 = vpop.f32.mrb[50].mxu0 }
 0x967   :  { %v1559_v44 = vmax.f32 %v1554_v30, 0.0  ;;  %v1804_v32 = vpop.f32.mrb[51].mxu0 }
 0x969   :  { %v1560_v12 = vpack.c.bf16 %v1559_v44, %v1559_v44 }
 0x96b   :  { %1822 = vmatmul.mubr.bf16.vlgmr.msra.gmra.mrb[48].mxu1 %v1560_v12 }
 0xa3e   :  { %v1666_v13 = vpop.f32.mrb[48].mxu1 }
 0xa3f   :  { %v1667_v34 = vadd.f32 %v1758_v33, %v1666_v13  ;;  %v1823_v35 = vpop.f32.mrb[49].mxu1 }
 0xa40   :  { %v1669_v36 = vpop.f32.mrb[50].mxu1 }
 0xa41   :  { %v1672_v7 = vmax.f32 %v1667_v34, 0.0  ;;  %v1824_v63 = vpop.f32.mrb[51].mxu1 }
 0xa43   :  { %1673 = vst [vmem:[#allocation9] sm:$0xff] %v1672_v7 }
 0xa44   :  { %2153 = shalt.err (!%p2150_p0)
}
 0xa45   :  { %s2154_s6 = scalar_lea.hbm %s2852_s7, 128 }
 0xa46   :  { %p2155_p1 = scmp.ne.s32.totalorder %s2852_s7, %s2154_s6  ;;  %p2158_p2 = scmp.lt.u32.totalorder %s2154_s6, %s2852_s7 }
 0xa48   :  { %p2160_p3 = pnand %p2158_p2, %p2155_p1 }
 0xa4a   :  { %2163 = shalt.err (!%p2160_p3)
}
 0xa4b   :  { %1683 = dma.vmem_to_hbm [thread:$0]  %s1681_s5, 128, %s2852_s7, [#allocation5]  }
 0xa4c   :  { %2168 = dma.done.wait [#allocation5], 128  }
 0xa4d   :  { %2169 = vsyncadd [#allocation5], 4294967168 }
 0xa4e   :  { %1687 = vsyncpa [#allocation4], 1 }
 0xa4f   :  { %1688 = vsyncpa [#allocation7], 1 }
 0xa50   :  { %1689 = vsyncpa [#allocation5], 1 }

</bundles_post_ra>
